<compile_context>
chip_gen: v6e
topology: v6e:2x2x1
jax: 0.10.0
libtpu: 0.0.40
codegen_flags: <defaults>
</compile_context>

<pallas_src>
import jax
import jax.numpy as jnp
from jax.experimental import pallas as pl
from jax.experimental.pallas import tpu as pltpu

_LANE = 128


def _round_up(x, m):
    return ((x + m - 1) // m) * m


def _tpu_memory_plan():
    """Generation-aware (vmem_limit_bytes, tensorcores_per_chip)."""
    kind = ""
    try:
        kind = jax.devices()[0].device_kind.lower()
    except Exception:
        pass
    phys = None
    try:
        phys = int(pltpu.get_tpu_info().vmem_capacity_bytes)
    except Exception:
        phys = None
    two_tc = "v7" in kind
    if phys is None:
        if two_tc:
            phys = 64 * 1024 * 1024
        elif ("v5" in kind) or ("v6" in kind):
            phys = 128 * 1024 * 1024
        else:
            phys = 64 * 1024 * 1024          # unknown chip: be conservative
    limit = max(32 * 1024 * 1024, int(phys * 0.75))
    if two_tc:
        limit = min(limit, 48 * 1024 * 1024)  # v7x: 64 MiB physical
    return limit, (2 if two_tc else 1)


def _pick_hw_tile(hw, max_tile=512):
    """Spatial reduction tile: divides HW, multiple of 8 (or HW itself)."""
    if hw <= max_tile:
        return hw
    t = max_tile - (max_tile % 8)
    while t >= 8:
        if hw % t == 0:
            return t
        t -= 8
    return hw


def _make_moco_kernel(inv_hw):
    def kernel(patches_ref, wconv_ref, wcls_ref, bcls_ref,
               x_ref, preds_ref, acc_ref):
        k = pl.program_id(1)

        @pl.when(k == 0)
        def _init():
            acc_ref[...] = jnp.zeros_like(acc_ref)

        bt, hwt, kd = patches_ref.shape
        cout_p = wconv_ref.shape[1]

        # --- encoder conv chunk as one large-M MXU matmul (bf16 in, f32 acc).
        #     The conv bias is folded into the trailing constant-1 lane of the
        #     patches, so no separate VPU bias-add pass is needed. ---
        p = patches_ref[...].reshape(bt * hwt, kd)                   # bf16
        conv = jnp.dot(p, wconv_ref[...],
                       preferred_element_type=jnp.float32)           # (bt*hwt, Cout_p) f32
        conv = jnp.maximum(conv, 0.0)                                 # relu (f32 VPU)

        # --- partial spatial sum into the f32 accumulator (avgpool numerator) ---
        acc_ref[...] += jnp.sum(conv.reshape(bt, hwt, cout_p), axis=1)

        @pl.when(k == pl.num_programs(1) - 1)
        def _finalize():
            feat = acc_ref[...] * inv_hw                              # (bt, Cout_p) f32
            x_ref[...] = feat                                         # avgpool output
            # Classifier.  The module's F.relu(x.view(N,-1)) is a no-op here
            # because feat >= 0 already, so it is omitted.
            preds = jnp.dot(feat.astype(jnp.bfloat16), wcls_ref[...],
                            preferred_element_type=jnp.float32) + bcls_ref[...]
            preds_ref[...] = preds

    return kernel


def moco_classifier_forward(img, w_conv, b_conv, w_cls, b_cls, *, b_tile=None):
    """img: (N, Cin, H, W) NCHW float32.  Returns (x, preds) like the module."""
    N, Cin, H, W = img.shape
    Cout, _, K, _ = w_conv.shape
    num_classes = w_cls.shape[0]
    if K % 2 != 1:
        raise ValueError("kernel size must be odd to match PyTorch padding=1 semantics")

    HW = H * W
    KD = Cin * K * K
    KD_e = KD + 1                               # + constant-1 lane carrying the conv bias
    Cout_p = _round_up(Cout, _LANE)
    NC_p = _round_up(num_classes, _LANE)

    vmem_limit, n_tc = _tpu_memory_plan()
    hw_tile = _pick_hw_tile(HW)
    hw_steps = HW // hw_tile

    # --- batch tile selection (generation-aware, all live buffers counted) ---
    if b_tile is None:
        per_elem = (hw_tile * KD_e * 2 * 2      # bf16 patches block, double-buffered
                    + hw_tile * Cout_p * 4      # f32 conv chunk (live intermediate)
                    + Cout_p * 4                # f32 accumulator scratch
                    + (Cout_p + NC_p) * 4 * 2)  # f32 outputs, double-buffered
        fixed = (KD_e * Cout_p + Cout_p * NC_p) * 2 * 2 + NC_p * 4 * 2
        budget = int(vmem_limit * 0.7)
        b_tile_max = max(1, (budget - fixed) // per_elem)
        if n_tc >= 2 and N >= 4:
            target = pl.cdiv(N, 2 * n_tc)       # >=2 grid steps per TensorCore (v7x)
        else:
            target = N                          # single-TC: fewest, largest steps
        b_tile = min(b_tile_max, target)
    b_tile = max(8, b_tile)                     # full-sublane output stores
    b_tile = _round_up(b_tile, 8)
    n_pad = _round_up(N, b_tile)                # pad batch instead of shrinking b_tile
    steps = n_pad // b_tile

    # --- im2col glue (plain JAX): stride 1, 'same' padding for odd K.
    #     Last dim stays at KD+1 = 37 (NOT padded to 128 in HBM); the extra
    #     lane is 1.0 and carries the conv bias through the matmul. ---
    pad = (K - 1) // 2
    padded = jnp.pad(img, ((0, 0), (0, 0), (pad, pad), (pad, pad)))
    patches = jnp.stack(
        [padded[:, :, ky:ky + H, kx:kx + W] for ky in range(K) for kx in range(K)],
        axis=2)                                                      # (N, Cin, K*K, H, W)
    patches = patches.transpose(0, 3, 4, 1, 2).reshape(N, HW, KD)    # cols = (cin, ky, kx)
    ones = jnp.ones((N, HW, 1), dtype=patches.dtype)
    patches = jnp.concatenate([patches, ones], axis=-1).astype(jnp.bfloat16)
    if n_pad > N:
        patches = jnp.pad(patches, ((0, n_pad - N), (0, 0), (0, 0)))

    # Weights: conv weight gets the bias appended as row KD; Cout padded to a
    # full 128-lane tile with exact zeros (padded lanes stay 0 through relu /
    # mean / classifier).  Matmul operands in bf16, f32 accumulation.
    wconv2d = jnp.concatenate(
        [w_conv.reshape(Cout, KD), b_conv.reshape(Cout, 1)], axis=1).T        # (KD+1, Cout)
    wconv2d = jnp.pad(wconv2d, ((0, 0), (0, Cout_p - Cout))).astype(jnp.bfloat16)
    wcls2d = jnp.pad(w_cls.T, ((0, Cout_p - Cout),
                               (0, NC_p - num_classes))).astype(jnp.bfloat16)
    bcls2d = jnp.pad(b_cls.reshape(1, num_classes).astype(jnp.float32),
                     ((0, 0), (0, NC_p - num_classes)))

    x_pad, preds_pad = pl.pallas_call(
        _make_moco_kernel(1.0 / HW),
        out_shape=(jax.ShapeDtypeStruct((n_pad, Cout_p), jnp.float32),
                   jax.ShapeDtypeStruct((n_pad, NC_p), jnp.float32)),
        grid_spec=pltpu.PrefetchScalarGridSpec(
            num_scalar_prefetch=0,
            grid=(steps, hw_steps),                      # reduction axis last
            in_specs=[
                pl.BlockSpec((b_tile, hw_tile, KD_e), lambda i, k: (i, k, 0)),
                pl.BlockSpec((KD_e, Cout_p), lambda i, k: (0, 0)),
                pl.BlockSpec((Cout_p, NC_p), lambda i, k: (0, 0)),
                pl.BlockSpec((1, NC_p), lambda i, k: (0, 0)),
            ],
            out_specs=[
                pl.BlockSpec((b_tile, Cout_p), lambda i, k: (i, 0)),
                pl.BlockSpec((b_tile, NC_p), lambda i, k: (i, 0)),
            ],
            scratch_shapes=[pltpu.VMEM((b_tile, Cout_p), jnp.float32)],
        ),
        compiler_params=pltpu.CompilerParams(
            dimension_semantics=("parallel", "arbitrary"),
            vmem_limit_bytes=vmem_limit),
    )(patches, wconv2d, wcls2d, bcls2d)

    x = x_pad[:N, :Cout].reshape(N, Cout, 1, 1)          # NCHW like PyTorch avgpool output
    preds = preds_pad[:N, :num_classes]
    return x, preds


def _reference_forward(img, w_conv, b_conv, w_cls, b_cls):
    """Pure-JAX fp32 reference reproducing the PyTorch forward semantics."""
    conv = jax.lax.conv_general_dilated(
        img, w_conv, window_strides=(1, 1), padding=((1, 1), (1, 1)),
        dimension_numbers=("NCHW", "OIHW", "NCHW"))
    conv = conv + b_conv.reshape(1, -1, 1, 1)
    conv = jnp.maximum(conv, 0.0)
    x = jnp.mean(conv, axis=(2, 3), keepdims=True)       # AdaptiveAvgPool2d(1)
    flat = x.reshape(x.shape[0], -1)
    preds = jnp.maximum(flat, 0.0) @ w_cls.T + b_cls     # F.relu + Linear
    return x, preds


if __name__ == "__main__":
    # Small shapes: batch=2, channels=4, spatial=16x16, encoder feat=32, classes=10
    N, Cin, H, W = 2, 4, 16, 16
    Cout, K, num_classes = 32, 3, 10

    key = jax.random.PRNGKey(0)
    k_img, k_wc, k_bc, k_wl = jax.random.split(key, 4)

    img = jax.random.normal(k_img, (N, Cin, H, W), dtype=jnp.float32)

    # Backbone params ("pretrained": deterministic random init, not re-initialized)
    w_conv = jax.random.normal(k_wc, (Cout, Cin, K, K), dtype=jnp.float32) * 0.05
    b_conv = jax.random.normal(k_bc, (Cout,), dtype=jnp.float32) * 0.01

    # Classifier params: weights_init_classifier -> normal(std=0.001), bias=0
    w_cls = jax.random.normal(k_wl, (num_classes, Cout), dtype=jnp.float32) * 0.001
    b_cls = jnp.zeros((num_classes,), dtype=jnp.float32)

    x, preds = moco_classifier_forward(img, w_conv, b_conv, w_cls, b_cls)
    jax.block_until_ready((x, preds))

    x_ref, preds_ref = _reference_forward(img, w_conv, b_conv, w_cls, b_cls)
    assert x.shape == (N, Cout, 1, 1) and preds.shape == (N, num_classes)
    # bf16 matmul operands -> loosened tolerances vs. the fp32 reference.
    assert jnp.allclose(x, x_ref, atol=1e-2, rtol=1e-1)
    assert jnp.allclose(preds, preds_ref, atol=2e-4, rtol=1e-1)

    print("KERNEL_OK")
</pallas_src>

<mosaic_0001>
module attributes {stable_mosaic.version = 11 : i64} {
  func.func @kernel(%arg0: i32, %arg1: i32, %arg2: memref<8x256x37xbf16, #tpu.memory_space<vmem>>, %arg3: memref<37x128xbf16, #tpu.memory_space<vmem>>, %arg4: memref<128x128xbf16, #tpu.memory_space<vmem>>, %arg5: memref<1x128xf32, #tpu.memory_space<vmem>>, %arg6: memref<8x128xf32, #tpu.memory_space<vmem>>, %arg7: memref<8x128xf32, #tpu.memory_space<vmem>>, %arg8: memref<8x128xf32, #tpu.memory_space<vmem>>) attributes {dimension_semantics = [#tpu.dimension_semantics<parallel>, #tpu.dimension_semantics<arbitrary>], iteration_bounds = array<i64: 1, 1>, scalar_prefetch = 0 : i64, scratch_operands = 1 : i64, tpu.core_type = #tpu.core_type<tc>, window_params = [{transform_indices = @transform_0, window_bounds = array<i64: 8, 256, 37>}, {pipeline_mode = #tpu.pipeline_mode<synchronous>, transform_indices = @transform_1, window_bounds = array<i64: 37, 128>}, {pipeline_mode = #tpu.pipeline_mode<synchronous>, transform_indices = @transform_2, window_bounds = array<i64: 128, 128>}, {pipeline_mode = #tpu.pipeline_mode<synchronous>, transform_indices = @transform_3, window_bounds = array<i64: 1, 128>}, {transform_indices = @transform_4, window_bounds = array<i64: 8, 128>}, {transform_indices = @transform_5, window_bounds = array<i64: 8, 128>}]} {
    %c0_i32 = arith.constant 0 : i32
    %0 = arith.cmpi eq, %arg1, %c0_i32 : i32
    %1 = arith.extui %0 : i1 to i32
    %c0_i32_0 = arith.constant 0 : i32
    %2 = arith.cmpi ne, %1, %c0_i32_0 : i32
    scf.if %2 {
      %cst_13 = arith.constant 0.000000e+00 : f32
      %17 = vector.broadcast %cst_13 : f32 to vector<8x128xf32>
      %c0_14 = arith.constant 0 : index
      %c0_15 = arith.constant 0 : index
      %18 = vector.load %arg8[%c0_14, %c0_15] : memref<8x128xf32, #tpu.memory_space<vmem>>, vector<8x128xf32>
      tpu.vector_store %arg8[%c0_14, %c0_15], %17 {strides = array<i32>} : memref<8x128xf32, #tpu.memory_space<vmem>>, vector<8x128xf32>,
    } else {
    }
    %c0 = arith.constant 0 : index
    %c0_1 = arith.constant 0 : index
    %c0_2 = arith.constant 0 : index
    %3 = vector.load %arg2[%c0, %c0_1, %c0_2] : memref<8x256x37xbf16, #tpu.memory_space<vmem>>, vector<8x256x37xbf16>
    %4 = vector.shape_cast %3 : vector<8x256x37xbf16> to vector<2048x37xbf16>
    %c0_3 = arith.constant 0 : index
    %c0_4 = arith.constant 0 : index
    %5 = vector.load %arg3[%c0_3, %c0_4] : memref<37x128xbf16, #tpu.memory_space<vmem>>, vector<37x128xbf16>
    %cst = arith.constant dense<0.000000e+00> : vector<2048x128xf32>
    %6 = tpu.matmul %4, %5, %cst {dimension_numbers = #tpu.dot_dimension_numbers<[1], [0], [0], [1], [0, 0, 1, 1], [], []>} : vector<2048x37xbf16>, vector<37x128xbf16>, vector<2048x128xf32> -> vector<2048x128xf32>
    %cst_5 = arith.constant 0.000000e+00 : f32
    %7 = vector.broadcast %cst_5 : f32 to vector<2048x128xf32>
    %8 = arith.maximumf %6, %7 : vector<2048x128xf32>
    %c0_6 = arith.constant 0 : index
    %c0_7 = arith.constant 0 : index
    %9 = vector.load %arg8[%c0_6, %c0_7] : memref<8x128xf32, #tpu.memory_space<vmem>>, vector<8x128xf32>
    %10 = vector.shape_cast %8 : vector<2048x128xf32> to vector<8x256x128xf32>
    %cst_8 = arith.constant dense<0.000000e+00> : vector<8x128xf32>
    %11 = vector.multi_reduction <add>, %10, %cst_8 [1] : vector<8x256x128xf32> to vector<8x128xf32>
    %12 = arith.addf %9, %11 : vector<8x128xf32>
    %c0_9 = arith.constant 0 : index
    %c0_10 = arith.constant 0 : index
    %13 = vector.load %arg8[%c0_9, %c0_10] : memref<8x128xf32, #tpu.memory_space<vmem>>, vector<8x128xf32>
    tpu.vector_store %arg8[%c0_9, %c0_10], %12 {strides = array<i32>} : memref<8x128xf32, #tpu.memory_space<vmem>>, vector<8x128xf32>,
    %c0_i32_11 = arith.constant 0 : i32
    %14 = arith.cmpi eq, %arg1, %c0_i32_11 : i32
    %15 = arith.extui %14 : i1 to i32
    %c0_i32_12 = arith.constant 0 : i32
    %16 = arith.cmpi ne, %15, %c0_i32_12 : i32
    scf.if %16 {
      %c0_13 = arith.constant 0 : index
      %c0_14 = arith.constant 0 : index
      %17 = vector.load %arg8[%c0_13, %c0_14] : memref<8x128xf32, #tpu.memory_space<vmem>>, vector<8x128xf32>
      %cst_15 = arith.constant 3.906250e-03 : f32
      %18 = vector.broadcast %cst_15 : f32 to vector<8x128xf32>
      %19 = arith.mulf %17, %18 : vector<8x128xf32>
      %c0_16 = arith.constant 0 : index
      %c0_17 = arith.constant 0 : index
      %20 = vector.load %arg6[%c0_16, %c0_17] : memref<8x128xf32, #tpu.memory_space<vmem>>, vector<8x128xf32>
      tpu.vector_store %arg6[%c0_16, %c0_17], %19 {strides = array<i32>} : memref<8x128xf32, #tpu.memory_space<vmem>>, vector<8x128xf32>,
      %21 = arith.truncf %19 : vector<8x128xf32> to vector<8x128xbf16>
      %c0_18 = arith.constant 0 : index
      %c0_19 = arith.constant 0 : index
      %22 = vector.load %arg4[%c0_18, %c0_19] : memref<128x128xbf16, #tpu.memory_space<vmem>>, vector<128x128xbf16>
      %cst_20 = arith.constant dense<0.000000e+00> : vector<8x128xf32>
      %23 = tpu.matmul %21, %22, %cst_20 {dimension_numbers = #tpu.dot_dimension_numbers<[1], [0], [0], [1], [0, 0, 1, 1], [], []>} : vector<8x128xbf16>, vector<128x128xbf16>, vector<8x128xf32> -> vector<8x128xf32>
      %c0_21 = arith.constant 0 : index
      %c0_22 = arith.constant 0 : index
      %24 = vector.load %arg5[%c0_21, %c0_22] : memref<1x128xf32, #tpu.memory_space<vmem>>, vector<1x128xf32>
      %25 = vector.broadcast %24 : vector<1x128xf32> to vector<8x128xf32>
      %26 = arith.addf %23, %25 : vector<8x128xf32>
      %c0_23 = arith.constant 0 : index
      %c0_24 = arith.constant 0 : index
      %27 = vector.load %arg7[%c0_23, %c0_24] : memref<8x128xf32, #tpu.memory_space<vmem>>, vector<8x128xf32>
      tpu.vector_store %arg7[%c0_23, %c0_24], %26 {strides = array<i32>} : memref<8x128xf32, #tpu.memory_space<vmem>>, vector<8x128xf32>,
    } else {
    }
    return
  }
  func.func @transform_0(%arg0: i32, %arg1: i32) -> (i32, i32, i32) {
    %c0_i32 = arith.constant 0 : i32
    %c0_i32_0 = arith.constant 0 : i32
    return %arg0, %arg1, %c0_i32 : i32, i32, i32
  }
  func.func @transform_1(%arg0: i32, %arg1: i32) -> (i32, i32) {
    %c0_i32 = arith.constant 0 : i32
    %c0_i32_0 = arith.constant 0 : i32
    %c0_i32_1 = arith.constant 0 : i32
    return %c0_i32, %c0_i32_0 : i32, i32
  }
  func.func @transform_2(%arg0: i32, %arg1: i32) -> (i32, i32) {
    %c0_i32 = arith.constant 0 : i32
    %c0_i32_0 = arith.constant 0 : i32
    %c0_i32_1 = arith.constant 0 : i32
    return %c0_i32, %c0_i32_0 : i32, i32
  }
  func.func @transform_3(%arg0: i32, %arg1: i32) -> (i32, i32) {
    %c0_i32 = arith.constant 0 : i32
    %c0_i32_0 = arith.constant 0 : i32
    %c0_i32_1 = arith.constant 0 : i32
    return %c0_i32, %c0_i32_0 : i32, i32
  }
  func.func @transform_4(%arg0: i32, %arg1: i32) -> (i32, i32) {
    %c0_i32 = arith.constant 0 : i32
    %c0_i32_0 = arith.constant 0 : i32
    return %arg0, %c0_i32 : i32, i32
  }
  func.func @transform_5(%arg0: i32, %arg1: i32) -> (i32, i32) {
    %c0_i32 = arith.constant 0 : i32
    %c0_i32_0 = arith.constant 0 : i32
    return %arg0, %c0_i32 : i32, i32
  }
}

</mosaic_0001>

<bundles_post_ra>
// kernel: tpu_custom_call.1
= control target key start
LH: loop header
LB: loop body
LE: loop exit
PB: predicated region body
PF: predicated region fallthrough
CT: control target
= control target key end

     0   :  { %11 = vsyncpa [#allocation4], 0  ;;  %vm1328_vm0 = vcmask 1041408   ;;  %vm1329_vm1 = vcmask 1042432   ;;  %v4001_v1 = vmov 65535   ;;  %vm943_vm2 = vcmask 302080   ;;  %s4704_s0 = inlined_call_operand.vmem [shape: bf16[8,256,37], index: 0, kind: input, shape index: {}]   ;;  %s4705_s1 = inlined_call_operand.vmem [shape: bf16[37,128], index: 1, kind: input, shape index: {}]   ;;  %s4706_s2 = inlined_call_operand.vmem [shape: bf16[128,128], index: 2, kind: input, shape index: {}]   ;;  %s4707_s3 = inlined_call_operand.vmem [shape: f32[1,128], index: 3, kind: input, shape index: {}]   ;;  %s4708_s4 = inlined_call_operand.hbm [shape: f32[8,128], index: 4, kind: output, shape index: {0}]   ;;  %s4709_s5 = inlined_call_operand.hbm [shape: f32[8,128], index: 5, kind: output, shape index: {1}]  }
   0x1   :  { %v3818_v0 = vld [vmem:[%s4705_s1 + $0x10] ss:$0 sps:$4 sm:$0x77]   ;;  %v1330_v2 = vsel %vm1328_vm0, 4294967295, %v4001_v1  ;;  %v3819_v4 = vld [vmem:[%s4705_s1 + $0x8] sm:$0xff]   ;;  %v3821_v6 = vld [vmem:[%s4704_s0] sm:$0xff]  }
   0x2   :  { %v1331_v3 = vsel %vm1329_vm1, %v1330_v2, 0  ;;  %3531 = vmatprep.mubr.msk.bf16.mxu0 %vm943_vm2, %v3821_v6  ;;  %v3820_v7 = vld [vmem:[%s4705_s1] sm:$0xff]   ;;  %v3822_v8 = vld [vmem:[%s4704_s0 + $0x8] sm:$0xff]   ;;  %v3823_v9 = vld [vmem:[%s4704_s0 + $0x10] sm:$0xff]  }
   0x3   :  { %v1333_v5 = vand.u32 %v3818_v0, %v1331_v3  ;;  %v3837_v10 = vld [vmem:[%s4704_s0 + $0x210] sm:$0xff]   ;;  %v3838_v11 = vld [vmem:[%s4704_s0 + $0x218] sm:$0xff]   ;;  %v3825_v13 = vld [vmem:[%s4704_s0 + $0x20] sm:$0xff]  }
   0x4   :  { %v3824_v12 = vld [vmem:[%s4704_s0 + $0x18] sm:$0xff]   ;;  %3663 = vmatprep.mubr.msk.bf16.mxu1 %vm943_vm2, %v3837_v10  ;;  %v3841_v14 = vld [vmem:[%s4704_s0 + $0x220] sm:$0xff]   ;;  %v3842_v15 = vld [vmem:[%s4704_s0 + $0x228] sm:$0xff]  }
   0x5   :  { %3525 = vmatprep.subr.bf16.mxu0 %v1333_v5  ;;  %3807 = vmatprep.subr.bf16.mxu1 %v1333_v5  ;;  %v3845_v16 = vld [vmem:[%s4704_s0 + $0x230] sm:$0xff]   ;;  %v3826_v17 = vld [vmem:[%s4704_s0 + $0x28] sm:$0xff]   ;;  %v3846_v19 = vld [vmem:[%s4704_s0 + $0x238] sm:$0xff]  }
   0x6   :  { %3526 = vmatpush3.bf16.msra.mxu0 %v1333_v5  ;;  %3810 = vmatpush3.bf16.msra.mxu1 %v1333_v5  ;;  %v3827_v18 = vld [vmem:[%s4704_s0 + $0x30] sm:$0xff]   ;;  %v3849_v20 = vld [vmem:[%s4704_s0 + $0x240] sm:$0xff]   ;;  %v3828_v21 = vld [vmem:[%s4704_s0 + $0x38] sm:$0xff]  }
   0x7   :  { %3527 = vmatprep.subr.bf16.mxu0 %v3819_v4  ;;  %3808 = vmatprep.subr.bf16.mxu1 %v3819_v4  ;;  %v3829_v22 = vld [vmem:[%s4704_s0 + $0x40] sm:$0xff]   ;;  %v3850_v23 = vld [vmem:[%s4704_s0 + $0x248] sm:$0xff]   ;;  %v3853_v24 = vld [vmem:[%s4704_s0 + $0x250] sm:$0xff]  }
   0x8   :  { %v3830_v25 = vld [vmem:[%s4704_s0 + $0x48] sm:$0xff]   ;;  %v3831_v26 = vld [vmem:[%s4704_s0 + $0x50] sm:$0xff]   ;;  %v3854_v27 = vld [vmem:[%s4704_s0 + $0x258] sm:$0xff]  }
   0x9   :  { %v3857_v28 = vld [vmem:[%s4704_s0 + $0x260] sm:$0xff]   ;;  %v3832_v29 = vld [vmem:[%s4704_s0 + $0x58] sm:$0xff]   ;;  %v3858_v31 = vld [vmem:[%s4704_s0 + $0x268] sm:$0xff]  }
   0xa   :  { %3528 = vmatpush3.bf16.msra.mxu0 %v3819_v4  ;;  %3811 = vmatpush3.bf16.msra.mxu1 %v3819_v4  ;;  %v3833_v30 = vld [vmem:[%s4704_s0 + $0x60] sm:$0xff]   ;;  %v3861_v32 = vld [vmem:[%s4704_s0 + $0x270] sm:$0xff]   ;;  %v3834_v33 = vld [vmem:[%s4704_s0 + $0x68] sm:$0xff]  }
   0xb   :  { %3529 = vmatprep.subr.bf16.mxu0 %v3820_v7  ;;  %3809 = vmatprep.subr.bf16.mxu1 %v3820_v7  ;;  %v3835_v34 = vld [vmem:[%s4704_s0 + $0x70] sm:$0xff]   ;;  %v3862_v35 = vld [vmem:[%s4704_s0 + $0x278] sm:$0xff]   ;;  %v3865_v36 = vld [vmem:[%s4704_s0 + $0x280] sm:$0xff]  }
   0xc   :  { %v3836_v37 = vld [vmem:[%s4704_s0 + $0x78] sm:$0xff]   ;;  %v3839_v38 = vld [vmem:[%s4704_s0 + $0x80] sm:$0xff]   ;;  %v3866_v39 = vld [vmem:[%s4704_s0 + $0x288] sm:$0xff]  }
   0xd   :  { %v3869_v40 = vld [vmem:[%s4704_s0 + $0x290] sm:$0xff]   ;;  %v3840_v41 = vld [vmem:[%s4704_s0 + $0x88] sm:$0xff]   ;;  %v3870_v43 = vld [vmem:[%s4704_s0 + $0x298] sm:$0xff]  }
   0xe   :  { %3530 = vmatpush3.bf16.msra.mxu0 %v3820_v7  ;;  %3812 = vmatpush3.bf16.msra.mxu1 %v3820_v7  ;;  %v3843_v42 = vld [vmem:[%s4704_s0 + $0x90] sm:$0xff]   ;;  %v3873_v44 = vld [vmem:[%s4704_s0 + $0x2a0] sm:$0xff]   ;;  %v3844_v45 = vld [vmem:[%s4704_s0 + $0x98] sm:$0xff]  }
   0xf   :  { %v3847_v46 = vld [vmem:[%s4704_s0 + $0xa0] sm:$0xff]   ;;  %v3874_v47 = vld [vmem:[%s4704_s0 + $0x2a8] sm:$0xff]   ;;  %v3877_v48 = vld [vmem:[%s4704_s0 + $0x2b0] sm:$0xff]  }
  0x10   :  { %v3848_v49 = vld [vmem:[%s4704_s0 + $0xa8] sm:$0xff]   ;;  %v3851_v50 = vld [vmem:[%s4704_s0 + $0xb0] sm:$0xff]   ;;  %v3878_v51 = vld [vmem:[%s4704_s0 + $0x2b8] sm:$0xff]  }
  0x11   :  { %3532 = vmatmul.mubr.msk.bf16.vlgmr.msra.gmra.mxu0 %vm943_vm2, %v3822_v8  ;;  %3664 = vmatmul.mubr.msk.bf16.vlgmr.msra.gmra.mxu1 %vm943_vm2, %v3838_v11  ;;  %v3881_v52 = vld [vmem:[%s4704_s0 + $0x2c0] sm:$0xff]   ;;  %v3852_v53 = vld [vmem:[%s4704_s0 + $0xb8] sm:$0xff]   ;;  %v3882_v55 = vld [vmem:[%s4704_s0 + $0x2c8] sm:$0xff]  }
  0x12   :  { %3535 = vmatprep.mubr.msk.bf16.mxu0 %vm943_vm2, %v3823_v9  ;;  %3667 = vmatprep.mubr.msk.bf16.mxu1 %vm943_vm2, %v3841_v14  ;;  %v3855_v54 = vld [vmem:[%s4704_s0 + $0xc0] sm:$0xff]   ;;  %v3885_v56 = vld [vmem:[%s4704_s0 + $0x2d0] sm:$0xff]   ;;  %v3856_v57 = vld [vmem:[%s4704_s0 + $0xc8] sm:$0xff]  }
  0x13   :  { %v3859_v58 = vld [vmem:[%s4704_s0 + $0xd0] sm:$0xff]   ;;  %v3886_v59 = vld [vmem:[%s4704_s0 + $0x2d8] sm:$0xff]   ;;  %v3889_v60 = vld [vmem:[%s4704_s0 + $0x2e0] sm:$0xff]  }
  0x14   :  { %v3860_v61 = vld [vmem:[%s4704_s0 + $0xd8] sm:$0xff]   ;;  %v3863_v62 = vld [vmem:[%s4704_s0 + $0xe0] sm:$0xff]   ;;  %v3890_v63 = vld [vmem:[%s4704_s0 + $0x2e8] sm:$0xff]  }
  0x15   :  { %v3893_v0 = vld [vmem:[%s4704_s0 + $0x2f0] sm:$0xff]   ;;  %v3864_v1 = vld [vmem:[%s4704_s0 + $0xe8] sm:$0xff]  }
  0x16   :  { %v3867_v2 = vld [vmem:[%s4704_s0 + $0xf0] sm:$0xff]  }
  0x19   :  { %3536 = vmatmul.mubr.msk.bf16.gmra.mxu0 %vm943_vm2, %v3824_v12  ;;  %3668 = vmatmul.mubr.msk.bf16.gmra.mxu1 %vm943_vm2, %v3842_v15 }
  0x1a   :  { %3539 = vmatprep.mubr.msk.bf16.mxu0 %vm943_vm2, %v3825_v13  ;;  %3671 = vmatprep.mubr.msk.bf16.mxu1 %vm943_vm2, %v3845_v16 }
  0x21   :  { %3540 = vmatmul.mubr.msk.bf16.gmra.mxu0 %vm943_vm2, %v3826_v17  ;;  %3672 = vmatmul.mubr.msk.bf16.gmra.mxu1 %vm943_vm2, %v3846_v19 }
  0x22   :  { %3543 = vmatprep.mubr.msk.bf16.mxu0 %vm943_vm2, %v3827_v18  ;;  %3675 = vmatprep.mubr.msk.bf16.mxu1 %vm943_vm2, %v3849_v20 }
  0x29   :  { %3544 = vmatmul.mubr.msk.bf16.gmra.mxu0 %vm943_vm2, %v3828_v21  ;;  %3676 = vmatmul.mubr.msk.bf16.gmra.mxu1 %vm943_vm2, %v3850_v23 }
  0x2a   :  { %3547 = vmatprep.mubr.msk.bf16.mxu0 %vm943_vm2, %v3829_v22  ;;  %3679 = vmatprep.mubr.msk.bf16.mxu1 %vm943_vm2, %v3853_v24 }
  0x31   :  { %3548 = vmatmul.mubr.msk.bf16.gmra.mxu0 %vm943_vm2, %v3830_v25  ;;  %3680 = vmatmul.mubr.msk.bf16.gmra.mxu1 %vm943_vm2, %v3854_v27 }
  0x32   :  { %3551 = vmatprep.mubr.msk.bf16.mxu0 %vm943_vm2, %v3831_v26  ;;  %3683 = vmatprep.mubr.msk.bf16.mxu1 %vm943_vm2, %v3857_v28 }
  0x39   :  { %3552 = vmatmul.mubr.msk.bf16.gmra.mxu0 %vm943_vm2, %v3832_v29  ;;  %3684 = vmatmul.mubr.msk.bf16.gmra.mxu1 %vm943_vm2, %v3858_v31 }
  0x3a   :  { %3555 = vmatprep.mubr.msk.bf16.mxu0 %vm943_vm2, %v3833_v30  ;;  %3687 = vmatprep.mubr.msk.bf16.mxu1 %vm943_vm2, %v3861_v32 }
  0x41   :  { %3556 = vmatmul.mubr.msk.bf16.gmra.mxu0 %vm943_vm2, %v3834_v33  ;;  %3688 = vmatmul.mubr.msk.bf16.gmra.mxu1 %vm943_vm2, %v3862_v35 }
  0x42   :  { %3559 = vmatprep.mubr.msk.bf16.mxu0 %vm943_vm2, %v3835_v34  ;;  %3691 = vmatprep.mubr.msk.bf16.mxu1 %vm943_vm2, %v3865_v36 }
  0x49   :  { %3560 = vmatmul.mubr.msk.bf16.gmra.mxu0 %vm943_vm2, %v3836_v37  ;;  %3692 = vmatmul.mubr.msk.bf16.gmra.mxu1 %vm943_vm2, %v3866_v39 }
  0x4a   :  { %3563 = vmatprep.mubr.msk.bf16.mxu0 %vm943_vm2, %v3839_v38  ;;  %3695 = vmatprep.mubr.msk.bf16.mxu1 %vm943_vm2, %v3869_v40 }
  0x51   :  { %3564 = vmatmul.mubr.msk.bf16.gmra.mxu0 %vm943_vm2, %v3840_v41  ;;  %3696 = vmatmul.mubr.msk.bf16.gmra.mxu1 %vm943_vm2, %v3870_v43 }
  0x52   :  { %3567 = vmatprep.mubr.msk.bf16.mxu0 %vm943_vm2, %v3843_v42  ;;  %3699 = vmatprep.mubr.msk.bf16.mxu1 %vm943_vm2, %v3873_v44 }
  0x59   :  { %3568 = vmatmul.mubr.msk.bf16.gmra.mxu0 %vm943_vm2, %v3844_v45  ;;  %3700 = vmatmul.mubr.msk.bf16.gmra.mxu1 %vm943_vm2, %v3874_v47 }
  0x5a   :  { %3571 = vmatprep.mubr.msk.bf16.mxu0 %vm943_vm2, %v3847_v46  ;;  %3703 = vmatprep.mubr.msk.bf16.mxu1 %vm943_vm2, %v3877_v48 }
  0x61   :  { %3572 = vmatmul.mubr.msk.bf16.gmra.mxu0 %vm943_vm2, %v3848_v49  ;;  %3704 = vmatmul.mubr.msk.bf16.gmra.mxu1 %vm943_vm2, %v3878_v51 }
  0x62   :  { %3575 = vmatprep.mubr.msk.bf16.mxu0 %vm943_vm2, %v3851_v50  ;;  %3707 = vmatprep.mubr.msk.bf16.mxu1 %vm943_vm2, %v3881_v52 }
  0x69   :  { %3576 = vmatmul.mubr.msk.bf16.gmra.mxu0 %vm943_vm2, %v3852_v53  ;;  %3708 = vmatmul.mubr.msk.bf16.gmra.mxu1 %vm943_vm2, %v3882_v55 }
  0x6a   :  { %3579 = vmatprep.mubr.msk.bf16.mxu0 %vm943_vm2, %v3855_v54  ;;  %3711 = vmatprep.mubr.msk.bf16.mxu1 %vm943_vm2, %v3885_v56 }
  0x71   :  { %3580 = vmatmul.mubr.msk.bf16.gmra.mxu0 %vm943_vm2, %v3856_v57  ;;  %3712 = vmatmul.mubr.msk.bf16.gmra.mxu1 %vm943_vm2, %v3886_v59 }
  0x72   :  { %3583 = vmatprep.mubr.msk.bf16.mxu0 %vm943_vm2, %v3859_v58  ;;  %3715 = vmatprep.mubr.msk.bf16.mxu1 %vm943_vm2, %v3889_v60 }
  0x79   :  { %3584 = vmatmul.mubr.msk.bf16.gmra.mxu0 %vm943_vm2, %v3860_v61  ;;  %3716 = vmatmul.mubr.msk.bf16.gmra.mxu1 %vm943_vm2, %v3890_v63 }
  0x7a   :  { %3587 = vmatprep.mubr.msk.bf16.mxu0 %vm943_vm2, %v3863_v62  ;;  %3719 = vmatprep.mubr.msk.bf16.mxu1 %vm943_vm2, %v3893_v0 }
  0x81   :  { %3588 = vmatmul.mubr.msk.bf16.gmra.mxu0 %vm943_vm2, %v3864_v1 }
  0x82   :  { %12 = vsyncpa [#allocation6], 0  ;;  %3591 = vmatprep.mubr.msk.bf16.mxu0 %vm943_vm2, %v3867_v2  ;;  %v3894_v3 = vld [vmem:[%s4704_s0 + $0x2f8] sm:$0xff]   ;;  %v3897_v4 = vld [vmem:[%s4704_s0 + $0x300] sm:$0xff]   ;;  %v4002_v32 = vmov 0.0   ;;  %vm2953_vm3 = vcmask 1041409  }
  0x83   :  { %v3868_v5 = vld [vmem:[%s4704_s0 + $0xf8] sm:$0xff]   ;;  %v3871_v6 = vld [vmem:[%s4704_s0 + $0x100] sm:$0xff]   ;;  %3720 = vmatmul.mubr.msk.bf16.gmra.mxu1 %vm943_vm2, %v3894_v3  ;;  %v3898_v7 = vld [vmem:[%s4704_s0 + $0x308] sm:$0xff]   ;;  %3787 = vmatprep.subr.bf16.mxu1 %v4002_v32  ;;  %vm2955_vm4 = vcmask 1042434   ;;  %vm4003_vm5 = vmmov 0   ;;  %vm2957_vm6 = vcmask 1043459  }
  0x84   :  { %3723 = vmatprep.mubr.msk.bf16.mxu1 %vm943_vm2, %v3897_v4  ;;  %v3901_v8 = vld [vmem:[%s4704_s0 + $0x310] sm:$0xff]   ;;  %v3872_v9 = vld [vmem:[%s4704_s0 + $0x108] sm:$0xff]   ;;  %v3902_v11 = vld [vmem:[%s4704_s0 + $0x318] sm:$0xff]   ;;  %vm2959_vm7 = vcmask 1044484   ;;  %vm2961_vm8 = vcmask 1045509   ;;  %vm2963_vm9 = vcmask 1046534  }
  0x85   :  { %v3875_v10 = vld [vmem:[%s4704_s0 + $0x110] sm:$0xff]   ;;  %v3905_v12 = vld [vmem:[%s4704_s0 + $0x320] sm:$0xff]   ;;  %v3876_v13 = vld [vmem:[%s4704_s0 + $0x118] sm:$0xff]   ;;  %vm2965_vm10 = vcmask 1047559  }
  0x86   :  { %v3879_v14 = vld [vmem:[%s4704_s0 + $0x120] sm:$0xff]   ;;  %v3906_v15 = vld [vmem:[%s4704_s0 + $0x328] sm:$0xff]   ;;  %v3909_v16 = vld [vmem:[%s4704_s0 + $0x330] sm:$0xff]  }
  0x87   :  { %v3880_v17 = vld [vmem:[%s4704_s0 + $0x128] sm:$0xff]   ;;  %v3883_v18 = vld [vmem:[%s4704_s0 + $0x130] sm:$0xff]   ;;  %v3910_v19 = vld [vmem:[%s4704_s0 + $0x338] sm:$0xff]  }
  0x88   :  { %v3913_v20 = vld [vmem:[%s4704_s0 + $0x340] sm:$0xff]   ;;  %v3884_v21 = vld [vmem:[%s4704_s0 + $0x138] sm:$0xff]   ;;  %v3914_v23 = vld [vmem:[%s4704_s0 + $0x348] sm:$0xff]  }
  0x89   :  { %3592 = vmatmul.mubr.msk.bf16.gmra.mxu0 %vm943_vm2, %v3868_v5  ;;  %v3887_v22 = vld [vmem:[%s4704_s0 + $0x140] sm:$0xff]   ;;  %v3917_v24 = vld [vmem:[%s4704_s0 + $0x350] sm:$0xff]   ;;  %v3888_v25 = vld [vmem:[%s4704_s0 + $0x148] sm:$0xff]  }
  0x8a   :  { %3595 = vmatprep.mubr.msk.bf16.mxu0 %vm943_vm2, %v3871_v6  ;;  %v3891_v26 = vld [vmem:[%s4704_s0 + $0x150] sm:$0xff]   ;;  %v3918_v27 = vld [vmem:[%s4704_s0 + $0x358] sm:$0xff]   ;;  %v3921_v28 = vld [vmem:[%s4704_s0 + $0x360] sm:$0xff]  }
  0x8b   :  { %3724 = vmatmul.mubr.msk.bf16.gmra.mxu1 %vm943_vm2, %v3898_v7  ;;  %v3892_v29 = vld [vmem:[%s4704_s0 + $0x158] sm:$0xff]   ;;  %v3895_v30 = vld [vmem:[%s4704_s0 + $0x160] sm:$0xff]   ;;  %v3922_v33 = vld [vmem:[%s4704_s0 + $0x368] sm:$0xff]  }
  0x8c   :  { %3727 = vmatprep.mubr.msk.bf16.mxu1 %vm943_vm2, %v3901_v8  ;;  %v3947_v31 = vld [vmem:[%s4706_s2 + $0x38] sm:$0xff]   ;;  %v3925_v34 = vld [vmem:[%s4704_s0 + $0x370] sm:$0xff]   ;;  %v3896_v35 = vld [vmem:[%s4704_s0 + $0x168] sm:$0xff]  }
  0x8d   :  { %3788 = vmatpush3.bf16.msra.mxu1 %v3947_v31  ;;  %v3899_v36 = vld [vmem:[%s4704_s0 + $0x170] sm:$0xff]   ;;  %v3926_v37 = vld [vmem:[%s4704_s0 + $0x378] sm:$0xff]   ;;  %v3929_v38 = vld [vmem:[%s4704_s0 + $0x380] sm:$0xff]  }
  0x8e   :  { %3789 = vmatprep.subr.bf16.mxu1 %v4002_v32  ;;  %v3900_v39 = vld [vmem:[%s4704_s0 + $0x178] sm:$0xff]   ;;  %v3903_v40 = vld [vmem:[%s4704_s0 + $0x180] sm:$0xff]   ;;  %v3930_v41 = vld [vmem:[%s4704_s0 + $0x388] sm:$0xff]  }
  0x8f   :  { %v3933_v42 = vld [vmem:[%s4704_s0 + $0x390] sm:$0xff]   ;;  %v3904_v43 = vld [vmem:[%s4704_s0 + $0x188] sm:$0xff]   ;;  %v3934_v46 = vld [vmem:[%s4704_s0 + $0x398] sm:$0xff]  }
  0x90   :  { %v3907_v44 = vld [vmem:[%s4704_s0 + $0x190] sm:$0xff]   ;;  %v3937_v48 = vld [vmem:[%s4704_s0 + $0x3a0] sm:$0xff]   ;;  %v3908_v50 = vld [vmem:[%s4704_s0 + $0x198] sm:$0xff]  }
  0x91   :  { %3596 = vmatmul.mubr.msk.bf16.gmra.mxu0 %vm943_vm2, %v3872_v9  ;;  %v3911_v51 = vld [vmem:[%s4704_s0 + $0x1a0] sm:$0xff]   ;;  %v3938_v61 = vld [vmem:[%s4704_s0 + $0x3a8] sm:$0xff]   ;;  %v3939_v63 = vld [vmem:[%s4704_s0 + $0x3b0] sm:$0xff]  }
  0x92   :  { %3599 = vmatprep.mubr.msk.bf16.mxu0 %vm943_vm2, %v3875_v10  ;;  %v3912_v4 = vld [vmem:[%s4704_s0 + $0x1a8] sm:$0xff]   ;;  %v3915_v7 = vld [vmem:[%s4704_s0 + $0x1b0] sm:$0xff]  }
  0x93   :  { %3728 = vmatmul.mubr.msk.bf16.gmra.mxu1 %vm943_vm2, %v3902_v11 }
  0x94   :  { %3731 = vmatprep.mubr.msk.bf16.mxu1 %vm943_vm2, %v3905_v12 }
  0x99   :  { %3600 = vmatmul.mubr.msk.bf16.gmra.mxu0 %vm943_vm2, %v3876_v13 }
  0x9a   :  { %3603 = vmatprep.mubr.msk.bf16.mxu0 %vm943_vm2, %v3879_v14 }
  0x9b   :  { %3732 = vmatmul.mubr.msk.bf16.gmra.mxu1 %vm943_vm2, %v3906_v15 }
  0x9c   :  { %3735 = vmatprep.mubr.msk.bf16.mxu1 %vm943_vm2, %v3909_v16 }
  0xa1   :  { %3604 = vmatmul.mubr.msk.bf16.gmra.mxu0 %vm943_vm2, %v3880_v17  ;;  %v3940_v17 = vld [vmem:[%s4704_s0 + $0x3b8] sm:$0xff]  }
  0xa2   :  { %3607 = vmatprep.mubr.msk.bf16.mxu0 %vm943_vm2, %v3883_v18 }
  0xa3   :  { %3736 = vmatmul.mubr.msk.bf16.gmra.mxu1 %vm943_vm2, %v3910_v19  ;;  %v3941_v19 = vld [vmem:[%s4704_s0 + $0x3c0] sm:$0xff]  }
  0xa4   :  { %3739 = vmatprep.mubr.msk.bf16.mxu1 %vm943_vm2, %v3913_v20 }
  0xa9   :  { %3608 = vmatmul.mubr.msk.bf16.gmra.mxu0 %vm943_vm2, %v3884_v21 }
  0xaa   :  { %3611 = vmatprep.mubr.msk.bf16.mxu0 %vm943_vm2, %v3887_v22 }
  0xab   :  { %3740 = vmatmul.mubr.msk.bf16.gmra.mxu1 %vm943_vm2, %v3914_v23  ;;  %v3950_v23 = vld [vmem:[%s4706_s2 + $0x30] sm:$0xff]  }
  0xac   :  { %3743 = vmatprep.mubr.msk.bf16.mxu1 %vm943_vm2, %v3917_v24  ;;  %3790 = vmatpush3.bf16.msra.mxu1 %v3950_v23 }
  0xad   :  { %3791 = vmatprep.subr.bf16.mxu1 %v4002_v32 }
  0xb1   :  { %3612 = vmatmul.mubr.msk.bf16.gmra.mxu0 %vm943_vm2, %v3888_v25  ;;  %v3916_v25 = vld [vmem:[%s4704_s0 + $0x1b8] sm:$0xff]  }
  0xb2   :  { %3615 = vmatprep.mubr.msk.bf16.mxu0 %vm943_vm2, %v3891_v26 }
  0xb3   :  { %3744 = vmatmul.mubr.msk.bf16.gmra.mxu1 %vm943_vm2, %v3918_v27 }
  0xb4   :  { %3747 = vmatprep.mubr.msk.bf16.mxu1 %vm943_vm2, %v3921_v28  ;;  %v3919_v28 = vld [vmem:[%s4704_s0 + $0x1c0] sm:$0xff]  }
  0xb9   :  { %3616 = vmatmul.mubr.msk.bf16.gmra.mxu0 %vm943_vm2, %v3892_v29 }
  0xba   :  { %3619 = vmatprep.mubr.msk.bf16.mxu0 %vm943_vm2, %v3895_v30 }
  0xbb   :  { %3748 = vmatmul.mubr.msk.bf16.gmra.mxu1 %vm943_vm2, %v3922_v33 }
  0xbc   :  { %3751 = vmatprep.mubr.msk.bf16.mxu1 %vm943_vm2, %v3925_v34 }
  0xc1   :  { %3620 = vmatmul.mubr.msk.bf16.gmra.mxu0 %vm943_vm2, %v3896_v35 }
  0xc2   :  { %3623 = vmatprep.mubr.msk.bf16.mxu0 %vm943_vm2, %v3899_v36 }
  0xc3   :  { %3752 = vmatmul.mubr.msk.bf16.gmra.mxu1 %vm943_vm2, %v3926_v37 }
  0xc4   :  { %3755 = vmatprep.mubr.msk.bf16.mxu1 %vm943_vm2, %v3929_v38 }
  0xc9   :  { %3624 = vmatmul.mubr.msk.bf16.gmra.mxu0 %vm943_vm2, %v3900_v39  ;;  %v3942_v39 = vld [vmem:[%s4704_s0 + $0x3c8] sm:$0xff]  }
  0xca   :  { %3627 = vmatprep.mubr.msk.bf16.mxu0 %vm943_vm2, %v3903_v40 }
  0xcb   :  { %3756 = vmatmul.mubr.msk.bf16.gmra.mxu1 %vm943_vm2, %v3930_v41  ;;  %v3943_v41 = vld [vmem:[%s4704_s0 + $0x3d0] sm:$0xff]  }
  0xcc   :  { %3759 = vmatprep.mubr.msk.bf16.mxu1 %vm943_vm2, %v3933_v42 }
  0xd1   :  { %v3533_v45 = vpop.f32.mrf.mxu0  ;;  %3628 = vmatmul.mubr.msk.bf16.gmra.mxu0 %vm943_vm2, %v3904_v43  ;;  %v4462_v52 = vpop.f32.mrf.mxu1 }
  0xd2   :  { %3631 = vmatprep.mubr.msk.bf16.mxu0 %vm943_vm2, %v3907_v44  ;;  %v2394_v58 = vmax.f32 %v3533_v45, 0.0 }
  0xd3   :  { %v1369_v47 = vpop.f32.mrf.mxu0  ;;  %3760 = vmatmul.mubr.msk.bf16.gmra.mxu1 %vm943_vm2, %v3934_v46  ;;  %v4466_v56 = vpop.f32.mrf.mxu1  ;;  %v3920_v46 = vld [vmem:[%s4704_s0 + $0x1c8] sm:$0xff]  }
  0xd4   :  { %3763 = vmatprep.mubr.msk.bf16.mxu1 %vm943_vm2, %v3937_v48  ;;  %v2392_v54 = vmax.f32 %v1369_v47, 0.0 }
  0xd5   :  { %v3534_v49 = vpop.f32.mrf.mxu0  ;;  %v4470_v60 = vpop.f32.mrf.mxu1 }
  0xd6   :  { %v2395_v0 = vmax.f32 %v3534_v49, 0.0  ;;  %v3923_v49 = vld [vmem:[%s4704_s0 + $0x1d0] sm:$0xff]  }
  0xd7   :  { %v1372_v53 = vpop.f32.mrf.mxu0  ;;  %v4478_v2 = vpop.f32.mrf.mxu1 }
  0xd8   :  { %v2393_v55 = vmax.f32 %v1372_v53, 0.0 }
  0xd9   :  { %v3537_v57 = vpop.f32.mrf.mxu0  ;;  %3632 = vmatmul.mubr.msk.bf16.gmra.mxu0 %vm943_vm2, %v3908_v50  ;;  %v4486_v8 = vpop.f32.mrf.mxu1 }
  0xda   :  { %v2649_v59 = vadd.f32 %v2393_v55, %v2392_v54  ;;  %3635 = vmatprep.mubr.msk.bf16.mxu0 %vm943_vm2, %v3911_v51  ;;  %v2398_v14 = vmax.f32 %v3537_v57, 0.0 }
  0xdb   :  { %v1385_v62 = vpop.f32.mrf.mxu0  ;;  %3764 = vmatmul.mubr.msk.bf16.gmra.mxu1 %vm943_vm2, %v3938_v61  ;;  %v4490_v12 = vpop.f32.mrf.mxu1 }
  0xdc   :  { %v2650_v1 = vadd.f32 %v2649_v59, %v2394_v58  ;;  %v2396_v5 = vmax.f32 %v1385_v62, 0.0  ;;  %3767 = vmatprep.mubr.msk.bf16.mxu1 %vm943_vm2, %v3939_v63  ;;  %v3944_v62 = vld [vmem:[%s4704_s0 + $0x3d8] sm:$0xff]  }
  0xdd   :  { %v3538_v3 = vpop.f32.mrf.mxu0  ;;  %v4494_v16 = vpop.f32.mrf.mxu1 }
  0xde   :  { %v2651_v6 = vadd.f32 %v2650_v1, %v2395_v0  ;;  %v2399_v20 = vmax.f32 %v3538_v3, 0.0  ;;  %v3945_v0 = vld [vmem:[%s4704_s0 + $0x3e0] sm:$0xff]  }
  0xdf   :  { %v1388_v9 = vpop.f32.mrf.mxu0  ;;  %v4502_v22 = vpop.f32.mrf.mxu1 }
  0xe0   :  { %v2652_v10 = vadd.f32 %v2651_v6, %v2396_v5  ;;  %v2397_v11 = vmax.f32 %v1388_v9, 0.0  ;;  %v3951_v5 = vld [vmem:[%s4706_s2 + $0x28] sm:$0xff]  }
  0xe1   :  { %v3541_v13 = vpop.f32.mrf.mxu0  ;;  %3636 = vmatmul.mubr.msk.bf16.gmra.mxu0 %vm943_vm2, %v3912_v4  ;;  %v4513_v29 = vpop.f32.mrf.mxu1  ;;  %3792 = vmatpush3.bf16.msra.mxu1 %v3951_v5 }
  0xe2   :  { %v2653_v15 = vadd.f32 %v2652_v10, %v2397_v11  ;;  %3639 = vmatprep.mubr.msk.bf16.mxu0 %vm943_vm2, %v3915_v7  ;;  %v2402_v36 = vmax.f32 %v3541_v13, 0.0  ;;  %v3924_v7 = vld [vmem:[%s4704_s0 + $0x1d8] sm:$0xff]   ;;  %v3927_v11 = vld [vmem:[%s4704_s0 + $0x1e0] sm:$0xff]   ;;  %3793 = vmatprep.subr.bf16.mxu1 %v4002_v32 }
  0xe3   :  { %v1401_v18 = vpop.f32.mrf.mxu0  ;;  %3768 = vmatmul.mubr.msk.bf16.gmra.mxu1 %vm943_vm2, %v3940_v17  ;;  %v4517_v34 = vpop.f32.mrf.mxu1 }
  0xe4   :  { %v2654_v21 = vadd.f32 %v2653_v15, %v2398_v14  ;;  %v2400_v26 = vmax.f32 %v1401_v18, 0.0  ;;  %3771 = vmatprep.mubr.msk.bf16.mxu1 %vm943_vm2, %v3941_v19 }
  0xe5   :  { %v3542_v24 = vpop.f32.mrf.mxu0  ;;  %v4522_v38 = vpop.f32.mrf.mxu1 }
  0xe6   :  { %v2655_v27 = vadd.f32 %v2654_v21, %v2399_v20  ;;  %v2403_v42 = vmax.f32 %v3542_v24, 0.0  ;;  %v3946_v24 = vld [vmem:[%s4704_s0 + $0x3e8] sm:$0xff]  }
  0xe7   :  { %v1404_v30 = vpop.f32.mrf.mxu0  ;;  %v4530_v44 = vpop.f32.mrf.mxu1 }
  0xe8   :  { %v2656_v31 = vadd.f32 %v2655_v27, %v2400_v26  ;;  %v2401_v33 = vmax.f32 %v1404_v30, 0.0  ;;  %v3948_v26 = vld [vmem:[%s4704_s0 + $0x3f0] sm:$0xff]  }
  0xe9   :  { %v3545_v35 = vpop.f32.mrf.mxu0  ;;  %3640 = vmatmul.mubr.msk.bf16.gmra.mxu0 %vm943_vm2, %v3916_v25  ;;  %v4538_v50 = vpop.f32.mrf.mxu1 }
  0xea   :  { %v2657_v37 = vadd.f32 %v2656_v31, %v2401_v33  ;;  %3643 = vmatprep.mubr.msk.bf16.mxu0 %vm943_vm2, %v3919_v28  ;;  %v2406_v58 = vmax.f32 %v3545_v35, 0.0  ;;  %v3928_v33 = vld [vmem:[%s4704_s0 + $0x1e8] sm:$0xff]  }
  0xeb   :  { %v1417_v40 = vpop.f32.mrf.mxu0  ;;  %3772 = vmatmul.mubr.msk.bf16.gmra.mxu1 %vm943_vm2, %v3942_v39  ;;  %v4542_v55 = vpop.f32.mrf.mxu1 }
  0xec   :  { %v2658_v43 = vadd.f32 %v2657_v37, %v2402_v36  ;;  %v2404_v47 = vmax.f32 %v1417_v40, 0.0  ;;  %3775 = vmatprep.mubr.msk.bf16.mxu1 %vm943_vm2, %v3943_v41  ;;  %v3931_v37 = vld [vmem:[%s4704_s0 + $0x1f0] sm:$0xff]  }
  0xed   :  { %v3546_v45 = vpop.f32.mrf.mxu0  ;;  %v4546_v61 = vpop.f32.mrf.mxu1 }
  0xee   :  { %v2659_v48 = vadd.f32 %v2658_v43, %v2403_v42  ;;  %v2407_v1 = vmax.f32 %v3546_v45, 0.0 }
  0xef   :  { %v1420_v51 = vpop.f32.mrf.mxu0  ;;  %v4554_v4 = vpop.f32.mrf.mxu1 }
  0xf0   :  { %v2660_v53 = vadd.f32 %v2659_v48, %v2404_v47  ;;  %v2405_v54 = vmax.f32 %v1420_v51, 0.0 }
  0xf1   :  { %v3549_v57 = vpop.f32.mrf.mxu0  ;;  %3644 = vmatmul.mubr.msk.bf16.gmra.mxu0 %vm943_vm2, %v3920_v46  ;;  %v4565_v13 = vpop.f32.mrf.mxu1 }
  0xf2   :  { %v2661_v59 = vadd.f32 %v2660_v53, %v2405_v54  ;;  %3647 = vmatprep.mubr.msk.bf16.mxu0 %vm943_vm2, %v3923_v49  ;;  %v2410_v20 = vmax.f32 %v3549_v57, 0.0  ;;  %v3949_v49 = vld [vmem:[%s4704_s0 + $0x3f8] sm:$0xff]  }
  0xf3   :  { %v1433_v63 = vpop.f32.mrf.mxu0  ;;  %3776 = vmatmul.mubr.msk.bf16.gmra.mxu1 %vm943_vm2, %v3944_v62  ;;  %v4569_v18 = vpop.f32.mrf.mxu1 }
  0xf4   :  { %v2662_v3 = vadd.f32 %v2661_v59, %v2406_v58  ;;  %v2408_v9 = vmax.f32 %v1433_v63, 0.0  ;;  %3779 = vmatprep.mubr.msk.bf16.mxu1 %vm943_vm2, %v3945_v0  ;;  %v3932_v59 = vld [vmem:[%s4704_s0 + $0x1f8] sm:$0xff]   ;;  %v3935_v0 = vld [vmem:[%s4704_s0 + $0x200] sm:$0xff]  }
  0xf5   :  { %v3550_v6 = vpop.f32.mrf.mxu0  ;;  %v4574_v23 = vpop.f32.mrf.mxu1 }
  0xf6   :  { %v2663_v10 = vadd.f32 %v2662_v3, %v2407_v1  ;;  %v2411_v27 = vmax.f32 %v3550_v6, 0.0 }
  0xf7   :  { %v1436_v14 = vpop.f32.mrf.mxu0  ;;  %v4582_v30 = vpop.f32.mrf.mxu1 }
  0xf8   :  { %v2664_v15 = vadd.f32 %v2663_v10, %v2408_v9  ;;  %v2409_v17 = vmax.f32 %v1436_v14, 0.0 }
  0xf9   :  { %v3553_v19 = vpop.f32.mrf.mxu0  ;;  %3648 = vmatmul.mubr.msk.bf16.gmra.mxu0 %vm943_vm2, %v3924_v7  ;;  %v4590_v39 = vpop.f32.mrf.mxu1 }
  0xfa   :  { %v2665_v21 = vadd.f32 %v2664_v15, %v2409_v17  ;;  %3651 = vmatprep.mubr.msk.bf16.mxu0 %vm943_vm2, %v3927_v11  ;;  %v2414_v46 = vmax.f32 %v3553_v19, 0.0 }
  0xfb   :  { %v1449_v25 = vpop.f32.mrf.mxu0  ;;  %3780 = vmatmul.mubr.msk.bf16.gmra.mxu1 %vm943_vm2, %v3946_v24  ;;  %v4594_v43 = vpop.f32.mrf.mxu1  ;;  %v3936_v24 = vld [vmem:[%s4704_s0 + $0x208] sm:$0xff]  }
  0xfc   :  { %v2666_v28 = vadd.f32 %v2665_v21, %v2410_v20  ;;  %v2412_v35 = vmax.f32 %v1449_v25, 0.0  ;;  %3783 = vmatprep.mubr.msk.bf16.mxu1 %vm943_vm2, %v3948_v26 }
  0xfd   :  { %v3554_v31 = vpop.f32.mrf.mxu0  ;;  %v4598_v48 = vpop.f32.mrf.mxu1 }
  0xfe   :  { %v2667_v36 = vadd.f32 %v2666_v28, %v2411_v27  ;;  %v2415_v53 = vmax.f32 %v3554_v31, 0.0 }
  0xff   :  { %v1452_v40 = vpop.f32.mrf.mxu0  ;;  %v4603_v57 = vpop.f32.mrf.mxu1 }
 0x100   :  { %v2668_v41 = vadd.f32 %v2667_v36, %v2412_v35  ;;  %v2413_v42 = vmax.f32 %v1452_v40, 0.0 }
 0x101   :  { %v3557_v45 = vpop.f32.mrf.mxu0  ;;  %3652 = vmatmul.mubr.msk.bf16.gmra.mxu0 %vm943_vm2, %v3928_v33  ;;  %v4611_v1 = vpop.f32.mrf.mxu1 }
 0x102   :  { %v2669_v47 = vadd.f32 %v2668_v41, %v2413_v42  ;;  %3655 = vmatprep.mubr.msk.bf16.mxu0 %vm943_vm2, %v3931_v37  ;;  %v2418_v10 = vmax.f32 %v3557_v45, 0.0 }
 0x103   :  { %v1465_v51 = vpop.f32.mrf.mxu0  ;;  %3784 = vmatmul.mubr.msk.bf16.gmra.mxu1 %vm943_vm2, %v3949_v49  ;;  %v4614_v7 = vpop.f32.mrf.mxu1 }
 0x104   :  { %v2670_v54 = vadd.f32 %v2669_v47, %v2414_v46  ;;  %v2416_v62 = vmax.f32 %v1465_v51, 0.0  ;;  %3803 = vmatprep.mubr.msk.bf16.mxu1 %vm4003_vm5, %v4002_v32 }
 0x105   :  { %v3558_v58 = vpop.f32.mrf.mxu0  ;;  %v4618_v14 = vpop.f32.mrf.mxu1 }
 0x106   :  { %v2671_v63 = vadd.f32 %v2670_v54, %v2415_v53  ;;  %v2419_v17 = vmax.f32 %v3558_v58, 0.0 }
 0x107   :  { %v1468_v3 = vpop.f32.mrf.mxu0  ;;  %v4620_v20 = vpop.f32.mrf.mxu1 }
 0x108   :  { %v2672_v5 = vadd.f32 %v2671_v63, %v2416_v62  ;;  %v2417_v6 = vmax.f32 %v1468_v3, 0.0 }
 0x109   :  { %v3561_v9 = vpop.f32.mrf.mxu0  ;;  %3656 = vmatmul.mubr.msk.bf16.gmra.mxu0 %vm943_vm2, %v3932_v59  ;;  %v3693_v27 = vpop.f32.mrf.mxu1 }
 0x10a   :  { %v2673_v11 = vadd.f32 %v2672_v5, %v2417_v6  ;;  %3659 = vmatprep.mubr.msk.bf16.mxu0 %vm943_vm2, %v3935_v0  ;;  %v2422_v37 = vmax.f32 %v3561_v9, 0.0  ;;  %v2554_v53 = vmax.f32 %v3693_v27, 0.0 }
 0x10b   :  { %v1481_v15 = vpop.f32.mrf.mxu0  ;;  %v2009_v35 = vpop.f32.mrf.mxu1 }
 0x10c   :  { %v2674_v19 = vadd.f32 %v2673_v11, %v2418_v10  ;;  %v2420_v25 = vmax.f32 %v1481_v15, 0.0  ;;  %v2552_v45 = vmax.f32 %v2009_v35, 0.0 }
 0x10d   :  { %v3562_v21 = vpop.f32.mrf.mxu0  ;;  %v3694_v41 = vpop.f32.mrf.mxu1 }
 0x10e   :  { %v2675_v26 = vadd.f32 %v2674_v19, %v2419_v17  ;;  %v2423_v46 = vmax.f32 %v3562_v21, 0.0  ;;  %v2555_v63 = vmax.f32 %v3694_v41, 0.0 }
 0x10f   :  { %v1484_v28 = vpop.f32.mrf.mxu0  ;;  %v2012_v49 = vpop.f32.mrf.mxu1 }
 0x110   :  { %v2676_v31 = vadd.f32 %v2675_v26, %v2420_v25  ;;  %v2421_v33 = vmax.f32 %v1484_v28, 0.0  ;;  %v2553_v54 = vmax.f32 %v2012_v49, 0.0 }
 0x111   :  { %v3565_v36 = vpop.f32.mrf.mxu0  ;;  %3660 = vmatmul.mubr.msk.bf16.gmra.mxu0 %vm943_vm2, %v3936_v24  ;;  %v3697_v59 = vpop.f32.mrf.mxu1 }
 0x112   :  { %v2677_v40 = vadd.f32 %v2676_v31, %v2421_v33  ;;  %v2834_v0 = vadd.f32 %v2553_v54, %v2552_v45  ;;  %v2426_v15 = vmax.f32 %v3565_v36, 0.0  ;;  %v2558_v31 = vmax.f32 %v3697_v59, 0.0 }
 0x113   :  { %v1497_v42 = vpop.f32.mrf.mxu0  ;;  %v2025_v6 = vpop.f32.mrf.mxu1 }
 0x114   :  { %v2678_v47 = vadd.f32 %v2677_v40, %v2422_v37  ;;  %v2424_v3 = vmax.f32 %v1497_v42, 0.0  ;;  %v2835_v10 = vadd.f32 %v2834_v0, %v2554_v53  ;;  %v2556_v11 = vmax.f32 %v2025_v6, 0.0 }
 0x115   :  { %v3566_v51 = vpop.f32.mrf.mxu0  ;;  %v3698_v19 = vpop.f32.mrf.mxu1 }
 0x116   :  { %v4626_v58 = vadd.f32 %v2678_v47, %v2423_v46  ;;  %v2836_v24 = vadd.f32 %v2835_v10, %v2555_v63  ;;  %v2427_v25 = vmax.f32 %v3566_v51, 0.0  ;;  %v2559_v45 = vmax.f32 %v3698_v19, 0.0 }
 0x117   :  { %v1500_v62 = vpop.f32.mrf.mxu0  ;;  %v2028_v27 = vpop.f32.mrf.mxu1 }
 0x118   :  { %v2425_v5 = vmax.f32 %v1500_v62, 0.0  ;;  %v2837_v33 = vadd.f32 %v2836_v24, %v2556_v11  ;;  %v2557_v35 = vmax.f32 %v2028_v27, 0.0  ;;  %v3952_v11 = vld [vmem:[%s4706_s2 + $0x20] sm:$0xff]  }
 0x119   :  { %v3569_v9 = vpop.f32.mrf.mxu0  ;;  %v3701_v41 = vpop.f32.mrf.mxu1  ;;  %3794 = vmatpush3.bf16.msra.mxu1 %v3952_v11 }
 0x11a   :  { %v2686_v17 = vadd.f32 %v2425_v5, %v2424_v3  ;;  %v2838_v46 = vadd.f32 %v2837_v33, %v2557_v35  ;;  %v2430_v63 = vmax.f32 %v3569_v9, 0.0  ;;  %3795 = vmatprep.subr.bf16.mxu1 %v4002_v32 }
 0x11b   :  { %v1513_v21 = vpop.f32.mrf.mxu0  ;;  %v2041_v36 = vpop.f32.mrf.mxu1 }
 0x11c   :  { %v2687_v26 = vadd.f32 %v2686_v17, %v2426_v15  ;;  %v2428_v37 = vmax.f32 %v1513_v21, 0.0  ;;  %v2839_v54 = vadd.f32 %v2838_v46, %v2558_v31  ;;  %v2560_v62 = vmax.f32 %v2041_v36, 0.0 }
 0x11d   :  { %v3570_v28 = vpop.f32.mrf.mxu0  ;;  %v3702_v0 = vpop.f32.mrf.mxu1  ;;  %v2562_v17 = vmax.f32 %v3701_v41, 0.0 }
 0x11e   :  { %v2688_v40 = vadd.f32 %v2687_v26, %v2427_v25  ;;  %v2840_v5 = vadd.f32 %v2839_v54, %v2559_v45  ;;  %v2431_v59 = vmax.f32 %v3570_v28, 0.0  ;;  %v2563_v27 = vmax.f32 %v3702_v0, 0.0 }
 0x11f   :  { %v1516_v42 = vpop.f32.mrf.mxu0  ;;  %v2044_v10 = vpop.f32.mrf.mxu1 }
 0x120   :  { %v2689_v47 = vadd.f32 %v2688_v40, %v2428_v37  ;;  %v2429_v49 = vmax.f32 %v1516_v42, 0.0  ;;  %v2841_v19 = vadd.f32 %v2840_v5, %v2560_v62  ;;  %v2561_v21 = vmax.f32 %v2044_v10, 0.0 }
 0x121   :  { %v3573_v53 = vpop.f32.mrf.mxu0  ;;  %v3705_v26 = vpop.f32.mrf.mxu1 }
 0x122   :  { %v2690_v51 = vadd.f32 %v2689_v47, %v2429_v49  ;;  %v2842_v31 = vadd.f32 %v2841_v19, %v2561_v21  ;;  %v2434_v45 = vmax.f32 %v3573_v53, 0.0 }
 0x123   :  { %v1529_v3 = vpop.f32.mrf.mxu0  ;;  %v2057_v35 = vpop.f32.mrf.mxu1 }
 0x124   :  { %v2691_v6 = vadd.f32 %v2690_v51, %v2430_v63  ;;  %v2432_v24 = vmax.f32 %v1529_v3, 0.0  ;;  %v2843_v40 = vadd.f32 %v2842_v31, %v2562_v17  ;;  %v2564_v42 = vmax.f32 %v2057_v35, 0.0 }
 0x125   :  { %v3574_v15 = vpop.f32.mrf.mxu0  ;;  %v3706_v41 = vpop.f32.mrf.mxu1  ;;  %v2566_v51 = vmax.f32 %v3705_v26, 0.0 }
 0x126   :  { %v2692_v25 = vadd.f32 %v2691_v6, %v2431_v59  ;;  %v2844_v49 = vadd.f32 %v2843_v40, %v2563_v27  ;;  %v2435_v36 = vmax.f32 %v3574_v15, 0.0  ;;  %v2567_v11 = vmax.f32 %v3706_v41, 0.0 }
 0x127   :  { %v1532_v9 = vpop.f32.mrf.mxu0  ;;  %v2060_v62 = vpop.f32.mrf.mxu1 }
 0x128   :  { %v2693_v28 = vadd.f32 %v2692_v25, %v2432_v24  ;;  %v2433_v33 = vmax.f32 %v1532_v9, 0.0  ;;  %v2845_v0 = vadd.f32 %v2844_v49, %v2564_v42  ;;  %v2565_v3 = vmax.f32 %v2060_v62, 0.0  ;;  %v3953_v42 = vld [vmem:[%s4706_s2 + $0x18] sm:$0xff]  }
 0x129   :  { %v3577_v37 = vpop.f32.mrf.mxu0  ;;  %v3709_v6 = vpop.f32.mrf.mxu1  ;;  %3796 = vmatpush3.bf16.msra.mxu1 %v3953_v42 }
 0x12a   :  { %v2694_v46 = vadd.f32 %v2693_v28, %v2433_v33  ;;  %v2846_v19 = vadd.f32 %v2845_v0, %v2565_v3  ;;  %v2438_v27 = vmax.f32 %v3577_v37, 0.0  ;;  %3797 = vmatprep.subr.bf16.mxu1 %v4002_v32 }
 0x12b   :  { %v1545_v47 = vpop.f32.mrf.mxu0  ;;  %v2073_v53 = vpop.f32.mrf.mxu1 }
 0x12c   :  { %v2695_v54 = vadd.f32 %v2694_v46, %v2434_v45  ;;  %v2436_v5 = vmax.f32 %v1545_v47, 0.0  ;;  %v2847_v25 = vadd.f32 %v2846_v19, %v2566_v51  ;;  %v2568_v9 = vmax.f32 %v2073_v53, 0.0 }
 0x12d   :  { %v3578_v63 = vpop.f32.mrf.mxu0  ;;  %v3710_v31 = vpop.f32.mrf.mxu1  ;;  %v2570_v46 = vmax.f32 %v3709_v6, 0.0 }
 0x12e   :  { %v2696_v59 = vadd.f32 %v2695_v54, %v2435_v36  ;;  %v2848_v33 = vadd.f32 %v2847_v25, %v2567_v11  ;;  %v2439_v26 = vmax.f32 %v3578_v63, 0.0  ;;  %v2571_v62 = vmax.f32 %v3710_v31, 0.0 }
 0x12f   :  { %v1548_v10 = vpop.f32.mrf.mxu0  ;;  %v2076_v40 = vpop.f32.mrf.mxu1 }
 0x130   :  { %v2697_v17 = vadd.f32 %v2696_v59, %v2436_v5  ;;  %v2437_v21 = vmax.f32 %v1548_v10, 0.0  ;;  %v2849_v41 = vadd.f32 %v2848_v33, %v2568_v9  ;;  %v2569_v47 = vmax.f32 %v2076_v40, 0.0 }
 0x131   :  { %v3581_v24 = vpop.f32.mrf.mxu0  ;;  %v3713_v54 = vpop.f32.mrf.mxu1 }
 0x132   :  { %v2698_v15 = vadd.f32 %v2697_v17, %v2437_v21  ;;  %v2850_v51 = vadd.f32 %v2849_v41, %v2569_v47  ;;  %v2442_v11 = vmax.f32 %v3581_v24, 0.0 }
 0x133   :  { %v1561_v28 = vpop.f32.mrf.mxu0  ;;  %v2089_v3 = vpop.f32.mrf.mxu1 }
 0x134   :  { %v2699_v35 = vadd.f32 %v2698_v15, %v2438_v27  ;;  %v2440_v49 = vmax.f32 %v1561_v28, 0.0  ;;  %v2851_v59 = vadd.f32 %v2850_v51, %v2570_v46  ;;  %v2572_v10 = vmax.f32 %v2089_v3, 0.0 }
 0x135   :  { %v3582_v45 = vpop.f32.mrf.mxu0  ;;  %v3714_v6 = vpop.f32.mrf.mxu1  ;;  %v2574_v15 = vmax.f32 %v3713_v54, 0.0 }
 0x136   :  { %v2700_v36 = vadd.f32 %v2699_v35, %v2439_v26  ;;  %v2852_v21 = vadd.f32 %v2851_v59, %v2571_v62  ;;  %v2443_v53 = vmax.f32 %v3582_v45, 0.0  ;;  %v2575_v42 = vmax.f32 %v3714_v6, 0.0 }
 0x137   :  { %v1564_v37 = vpop.f32.mrf.mxu0  ;;  %v2092_v9 = vpop.f32.mrf.mxu1 }
 0x138   :  { %v2701_v63 = vadd.f32 %v2700_v36, %v2440_v49  ;;  %v2441_v0 = vmax.f32 %v1564_v37, 0.0  ;;  %v2853_v31 = vadd.f32 %v2852_v21, %v2572_v10  ;;  %v2573_v28 = vmax.f32 %v2092_v9, 0.0 }
 0x139   :  { %v3585_v5 = vpop.f32.mrf.mxu0  ;;  %v3717_v35 = vpop.f32.mrf.mxu1 }
 0x13a   :  { %v2702_v19 = vadd.f32 %v2701_v63, %v2441_v0  ;;  %v2854_v41 = vadd.f32 %v2853_v31, %v2573_v28  ;;  %v2446_v62 = vmax.f32 %v3585_v5, 0.0 }
 0x13b   :  { %v1577_v17 = vpop.f32.mrf.mxu0  ;;  %v2105_v24 = vpop.f32.mrf.mxu1 }
 0x13c   :  { %v2703_v25 = vadd.f32 %v2702_v19, %v2442_v11  ;;  %v2444_v33 = vmax.f32 %v1577_v17, 0.0  ;;  %v2855_v36 = vadd.f32 %v2854_v41, %v2574_v15  ;;  %v2576_v37 = vmax.f32 %v2105_v24, 0.0 }
 0x13d   :  { %v3586_v27 = vpop.f32.mrf.mxu0  ;;  %v3718_v51 = vpop.f32.mrf.mxu1  ;;  %v2578_v11 = vmax.f32 %v3717_v35, 0.0 }
 0x13e   :  { %v2704_v26 = vadd.f32 %v2703_v25, %v2443_v53  ;;  %v2856_v0 = vadd.f32 %v2855_v36, %v2575_v42  ;;  %v2447_v54 = vmax.f32 %v3586_v27, 0.0  ;;  %v2579_v9 = vmax.f32 %v3718_v51, 0.0 }
 0x13f   :  { %v1580_v40 = vpop.f32.mrf.mxu0  ;;  %v2108_v59 = vpop.f32.mrf.mxu1  ;;  %v2680_v51 = vrot.slane %v4626_v58, 4 }
 0x140   :  { %v2705_v46 = vadd.f32 %v2704_v26, %v2444_v33  ;;  %v2445_v47 = vmax.f32 %v1580_v40, 0.0  ;;  %v2857_v19 = vadd.f32 %v2856_v0, %v2576_v37  ;;  %v2577_v17 = vmax.f32 %v2108_v59, 0.0 }
 0x141   :  { %v3589_v49 = vpop.f32.mrf.mxu0 }
 0x142   :  { %v2706_v45 = vadd.f32 %v2705_v46, %v2445_v47  ;;  %v2858_v31 = vadd.f32 %v2857_v19, %v2577_v17  ;;  %v2450_v42 = vmax.f32 %v3589_v49, 0.0 }
 0x143   :  { %v1593_v63 = vpop.f32.mrf.mxu0  ;;  %v3721_v53 = vpop.f32.mrf.mxu1 }
 0x144   :  { %v2707_v3 = vadd.f32 %v2706_v45, %v2446_v62  ;;  %v2448_v6 = vmax.f32 %v1593_v63, 0.0  ;;  %v2859_v26 = vadd.f32 %v2858_v31, %v2578_v11  ;;  %v2582_v62 = vmax.f32 %v3721_v53, 0.0 }
 0x145   :  { %v3590_v10 = vpop.f32.mrf.mxu0  ;;  %v2121_v5 = vpop.f32.mrf.mxu1 }
 0x146   :  { %v2708_v21 = vadd.f32 %v2707_v3, %v2447_v54  ;;  %v2580_v40 = vmax.f32 %v2121_v5, 0.0  ;;  %v2860_v47 = vadd.f32 %v2859_v26, %v2579_v9  ;;  %v2451_v35 = vmax.f32 %v3590_v10, 0.0 }
 0x147   :  { %v1596_v25 = vpop.f32.mrf.mxu0  ;;  %v3722_v41 = vpop.f32.mrf.mxu1  ;;  %v2681_v10 = vadd.f32 %v2680_v51, %v4626_v58 }
 0x148   :  { %v2709_v15 = vadd.f32 %v2708_v21, %v2448_v6  ;;  %v2449_v28 = vmax.f32 %v1596_v25, 0.0  ;;  %v2861_v45 = vadd.f32 %v2860_v47, %v2580_v40  ;;  %v2583_v11 = vmax.f32 %v3722_v41, 0.0 }
 0x149   :  { %v3593_v33 = vpop.f32.mrf.mxu0  ;;  %v2124_v36 = vpop.f32.mrf.mxu1  ;;  %v2682_v47 = vrot.slane %v2681_v10, 2 }
 0x14a   :  { %v2710_v27 = vadd.f32 %v2709_v15, %v2449_v28  ;;  %v2581_v63 = vmax.f32 %v2124_v36, 0.0  ;;  %v2454_v9 = vmax.f32 %v3593_v33, 0.0 }
 0x14b   :  { %v1609_v46 = vpop.f32.mrf.mxu0  ;;  %v3725_v3 = vpop.f32.mrf.mxu1 }
 0x14c   :  { %v2711_v24 = vadd.f32 %v2710_v27, %v2450_v42  ;;  %v2452_v0 = vmax.f32 %v1609_v46, 0.0  ;;  %v2862_v19 = vadd.f32 %v2861_v45, %v2581_v63  ;;  %v2586_v41 = vmax.f32 %v3725_v3, 0.0 }
 0x14d   :  { %v3594_v37 = vpop.f32.mrf.mxu0  ;;  %v2137_v6 = vpop.f32.mrf.mxu1 }
 0x14e   :  { %v2712_v54 = vadd.f32 %v2711_v24, %v2451_v35  ;;  %v2863_v25 = vadd.f32 %v2862_v19, %v2582_v62  ;;  %v2584_v5 = vmax.f32 %v2137_v6, 0.0  ;;  %v2455_v26 = vmax.f32 %v3594_v37, 0.0 }
 0x14f   :  { %v1612_v59 = vpop.f32.mrf.mxu0  ;;  %v3726_v53 = vpop.f32.mrf.mxu1 }
 0x150   :  { %v2713_v49 = vadd.f32 %v2712_v54, %v2452_v0  ;;  %v2453_v17 = vmax.f32 %v1612_v59, 0.0  ;;  %v4638_v28 = vadd.f32 %v2863_v25, %v2583_v11  ;;  %v2587_v62 = vmax.f32 %v3726_v53, 0.0 }
 0x151   :  { %v3597_v21 = vpop.f32.mrf.mxu0  ;;  %v2140_v42 = vpop.f32.mrf.mxu1  ;;  %v2683_v11 = vadd.f32 %v2682_v47, %v2681_v10 }
 0x152   :  { %v2714_v31 = vadd.f32 %v2713_v49, %v2453_v17  ;;  %v2585_v46 = vmax.f32 %v2140_v42, 0.0  ;;  %v2458_v19 = vmax.f32 %v3597_v21, 0.0 }
 0x153   :  { %v1625_v15 = vpop.f32.mrf.mxu0  ;;  %v3729_v24 = vpop.f32.mrf.mxu1  ;;  %v2684_v42 = vrot.slane %v2683_v11, 1 }
 0x154   :  { %v2715_v40 = vadd.f32 %v2714_v31, %v2454_v9  ;;  %v2871_v45 = vadd.f32 %v2585_v46, %v2584_v5  ;;  %v2456_v33 = vmax.f32 %v1625_v15, 0.0  ;;  %v2590_v5 = vmax.f32 %v3729_v24, 0.0 }
 0x155   :  { %v3598_v27 = vpop.f32.mrf.mxu0  ;;  %v2153_v51 = vpop.f32.mrf.mxu1 }
 0x156   :  { %v2716_v35 = vadd.f32 %v2715_v40, %v2455_v26  ;;  %v2872_v54 = vadd.f32 %v2871_v45, %v2586_v41  ;;  %v2588_v59 = vmax.f32 %v2153_v51, 0.0  ;;  %v2459_v9 = vmax.f32 %v3598_v27, 0.0 }
 0x157   :  { %v1628_v36 = vpop.f32.mrf.mxu0  ;;  %v3730_v17 = vpop.f32.mrf.mxu1 }
 0x158   :  { %v2717_v58 = vrot.slane %v2716_v35, 4  ;;  %v2457_v63 = vmax.f32 %v1628_v36, 0.0  ;;  %v2873_v6 = vadd.f32 %v2872_v54, %v2587_v62  ;;  %v2591_v47 = vmax.f32 %v3730_v17, 0.0 }
 0x159   :  { %v3601_v0 = vpop.f32.mrf.mxu0  ;;  %v2156_v26 = vpop.f32.mrf.mxu1  ;;  %v2685_v54 = vadd.f32 %v2684_v42, %v2683_v11 }
 0x15a   :  { %v2718_v37 = vadd.f32 %v2717_v58, %v2716_v35  ;;  %v2723_v49 = vadd.f32 %v2457_v63, %v2456_v33  ;;  %v2874_v40 = vadd.f32 %v2873_v6, %v2588_v59  ;;  %v2589_v15 = vmax.f32 %v2156_v26, 0.0 }
 0x15b   :  { %v1641_v3 = vpop.f32.mrf.mxu0  ;;  %v3733_v45 = vpop.f32.mrf.mxu1  ;;  %v2462_v59 = vmax.f32 %v3601_v0, 0.0 }
 0x15c   :  { %v2719_v25 = vrot.slane %v2718_v37, 2  ;;  %v2724_v31 = vadd.f32 %v2723_v49, %v2458_v19  ;;  %v2460_v36 = vmax.f32 %v1641_v3, 0.0  ;;  %v2875_v21 = vadd.f32 %v2874_v40, %v2589_v15 }
 0x15d   :  { %v3602_v53 = vpop.f32.mrf.mxu0  ;;  %v2169_v62 = vpop.f32.mrf.mxu1  ;;  %v2594_v40 = vmax.f32 %v3733_v45, 0.0 }
 0x15e   :  { %v2720_v46 = vadd.f32 %v2719_v25, %v2718_v37  ;;  %v2725_v41 = vadd.f32 %v2724_v31, %v2459_v9  ;;  %v2876_v63 = vadd.f32 %v2875_v21, %v2590_v5  ;;  %v2592_v51 = vmax.f32 %v2169_v62, 0.0  ;;  %v3954_v31 = vld [vmem:[%s4706_s2 + $0x10] sm:$0xff]  }
 0x15f   :  { %v1644_v10 = vpop.f32.mrf.mxu0  ;;  %v3734_v49 = vpop.f32.mrf.mxu1  ;;  %v2463_v25 = vmax.f32 %v3602_v53, 0.0  ;;  %3798 = vmatpush3.bf16.msra.mxu1 %v3954_v31 }
 0x160   :  { %v2721_v35 = vrot.slane %v2720_v46, 1  ;;  %v2726_v58 = vadd.f32 %v2725_v41, %v2460_v36  ;;  %v2461_v33 = vmax.f32 %v1644_v10, 0.0  ;;  %v2877_v3 = vadd.f32 %v2876_v63, %v2591_v47  ;;  %3799 = vmatprep.subr.bf16.mxu1 %v4002_v32 }
 0x161   :  { %v3605_v27 = vpop.f32.mrf.mxu0  ;;  %v2172_v9 = vpop.f32.mrf.mxu1  ;;  %v2595_v36 = vmax.f32 %v3734_v49, 0.0 }
 0x162   :  { %v2722_v24 = vadd.f32 %v2721_v35, %v2720_v46  ;;  %v2727_v19 = vadd.f32 %v2726_v58, %v2461_v33  ;;  %v2878_v5 = vadd.f32 %v2877_v3, %v2592_v51  ;;  %v2593_v15 = vmax.f32 %v2172_v9, 0.0 }
 0x163   :  { %v1657_v37 = vpop.f32.mrf.mxu0  ;;  %v3737_v0 = vpop.f32.mrf.mxu1  ;;  %v2466_v33 = vmax.f32 %v3605_v27, 0.0 }
 0x164   :  { %v4640_v6 = vsel %vm2953_vm3, %v2722_v24, %v2685_v54  ;;  %v2728_v17 = vadd.f32 %v2727_v19, %v2462_v59  ;;  %v2464_v11 = vmax.f32 %v1657_v37, 0.0  ;;  %v2879_v41 = vadd.f32 %v2878_v5, %v2593_v15 }
 0x165   :  { %v3606_v26 = vpop.f32.mrf.mxu0  ;;  %v2185_v47 = vpop.f32.mrf.mxu1  ;;  %v2598_v37 = vmax.f32 %v3737_v0, 0.0 }
 0x166   :  { %v2729_v42 = vadd.f32 %v2728_v17, %v2463_v25  ;;  %v2880_v35 = vadd.f32 %v2879_v41, %v2594_v40  ;;  %v2596_v58 = vmax.f32 %v2185_v47, 0.0  ;;  %v2467_v54 = vmax.f32 %v3606_v26, 0.0 }
 0x167   :  { %v1660_v46 = vpop.f32.mrf.mxu0  ;;  %v3738_v45 = vpop.f32.mrf.mxu1 }
 0x168   :  { %v2730_v53 = vadd.f32 %v2729_v42, %v2464_v11  ;;  %v2465_v10 = vmax.f32 %v1660_v46, 0.0  ;;  %v2881_v51 = vadd.f32 %v2880_v35, %v2595_v36  ;;  %v2599_v5 = vmax.f32 %v3738_v45, 0.0 }
 0x169   :  { %v3609_v21 = vpop.f32.mrf.mxu0  ;;  %v2188_v59 = vpop.f32.mrf.mxu1 }
 0x16a   :  { %v2731_v62 = vadd.f32 %v2730_v53, %v2465_v10  ;;  %v2882_v49 = vadd.f32 %v2881_v51, %v2596_v58  ;;  %v2597_v3 = vmax.f32 %v2188_v59, 0.0  ;;  %v2470_v36 = vmax.f32 %v3609_v21, 0.0 }
 0x16b   :  { %v1673_v63 = vpop.f32.mrf.mxu0  ;;  %v3741_v9 = vpop.f32.mrf.mxu1 }
 0x16c   :  { %v2732_v24 = vadd.f32 %v2731_v62, %v2466_v33  ;;  %v2468_v25 = vmax.f32 %v1673_v63, 0.0  ;;  %v2883_v15 = vadd.f32 %v2882_v49, %v2597_v3  ;;  %v2602_v62 = vmax.f32 %v3741_v9, 0.0 }
 0x16d   :  { %v3610_v19 = vpop.f32.mrf.mxu0  ;;  %v2201_v27 = vpop.f32.mrf.mxu1 }
 0x16e   :  { %v2733_v17 = vadd.f32 %v2732_v24, %v2467_v54  ;;  %v2884_v46 = vadd.f32 %v2883_v15, %v2598_v37  ;;  %v2600_v41 = vmax.f32 %v2201_v27, 0.0  ;;  %v2471_v0 = vmax.f32 %v3610_v19, 0.0 }
 0x16f   :  { %v1676_v31 = vpop.f32.mrf.mxu0  ;;  %v3742_v53 = vpop.f32.mrf.mxu1 }
 0x170   :  { %v2734_v40 = vadd.f32 %v2733_v17, %v2468_v25  ;;  %v2469_v11 = vmax.f32 %v1676_v31, 0.0  ;;  %v2885_v47 = vadd.f32 %v2884_v46, %v2599_v5  ;;  %v2603_v49 = vmax.f32 %v3742_v53, 0.0 }
 0x171   :  { %v3613_v42 = vpop.f32.mrf.mxu0  ;;  %v2204_v58 = vpop.f32.mrf.mxu1 }
 0x172   :  { %v2735_v26 = vadd.f32 %v2734_v40, %v2469_v11  ;;  %v2886_v63 = vadd.f32 %v2885_v47, %v2600_v41  ;;  %v2601_v51 = vmax.f32 %v2204_v58, 0.0  ;;  %v2474_v5 = vmax.f32 %v3613_v42, 0.0 }
 0x173   :  { %v1689_v10 = vpop.f32.mrf.mxu0  ;;  %v3745_v24 = vpop.f32.mrf.mxu1 }
 0x174   :  { %v2736_v35 = vadd.f32 %v2735_v26, %v2470_v36  ;;  %v2472_v45 = vmax.f32 %v1689_v10, 0.0  ;;  %v2887_v3 = vadd.f32 %v2886_v63, %v2601_v51  ;;  %v2606_v26 = vmax.f32 %v3745_v24, 0.0 }
 0x175   :  { %v3614_v33 = vpop.f32.mrf.mxu0  ;;  %v2217_v21 = vpop.f32.mrf.mxu1 }
 0x176   :  { %v2737_v54 = vadd.f32 %v2736_v35, %v2471_v0  ;;  %v2888_v31 = vadd.f32 %v2887_v3, %v2602_v62  ;;  %v2604_v15 = vmax.f32 %v2217_v21, 0.0  ;;  %v2475_v9 = vmax.f32 %v3614_v33, 0.0 }
 0x177   :  { %v1692_v59 = vpop.f32.mrf.mxu0  ;;  %v3746_v40 = vpop.f32.mrf.mxu1 }
 0x178   :  { %v2738_v37 = vadd.f32 %v2737_v54, %v2472_v45  ;;  %v2473_v25 = vmax.f32 %v1692_v59, 0.0  ;;  %v2889_v27 = vadd.f32 %v2888_v31, %v2603_v49  ;;  %v2607_v63 = vmax.f32 %v3746_v40, 0.0 }
 0x179   :  { %v3617_v17 = vpop.f32.mrf.mxu0  ;;  %v2220_v41 = vpop.f32.mrf.mxu1 }
 0x17a   :  { %v2739_v19 = vadd.f32 %v2738_v37, %v2473_v25  ;;  %v2890_v10 = vadd.f32 %v2889_v27, %v2604_v15  ;;  %v2605_v47 = vmax.f32 %v2220_v41, 0.0  ;;  %v2478_v49 = vmax.f32 %v3617_v17, 0.0 }
 0x17b   :  { %v1705_v11 = vpop.f32.mrf.mxu0  ;;  %v3749_v35 = vpop.f32.mrf.mxu1 }
 0x17c   :  { %v2740_v46 = vadd.f32 %v2739_v19, %v2474_v5  ;;  %v2476_v53 = vmax.f32 %v1705_v11, 0.0  ;;  %v2891_v51 = vadd.f32 %v2890_v10, %v2605_v47  ;;  %v2610_v19 = vmax.f32 %v3749_v35, 0.0 }
 0x17d   :  { %v3618_v36 = vpop.f32.mrf.mxu0  ;;  %v2233_v42 = vpop.f32.mrf.mxu1 }
 0x17e   :  { %v2741_v0 = vadd.f32 %v2740_v46, %v2475_v9  ;;  %v2892_v59 = vadd.f32 %v2891_v51, %v2606_v26  ;;  %v2608_v3 = vmax.f32 %v2233_v42, 0.0  ;;  %v2479_v24 = vmax.f32 %v3618_v36, 0.0 }
 0x17f   :  { %v1708_v58 = vpop.f32.mrf.mxu0  ;;  %v3750_v37 = vpop.f32.mrf.mxu1 }
 0x180   :  { %v2742_v62 = vadd.f32 %v2741_v0, %v2476_v53  ;;  %v2477_v45 = vmax.f32 %v1708_v58, 0.0  ;;  %v2893_v21 = vadd.f32 %v2892_v59, %v2607_v63  ;;  %v2611_v10 = vmax.f32 %v3750_v37, 0.0  ;;  %v3955_v0 = vld [vmem:[%s4706_s2 + $0x8] sm:$0xff]  }
 0x181   :  { %v3621_v54 = vpop.f32.mrf.mxu0  ;;  %v2236_v15 = vpop.f32.mrf.mxu1  ;;  %3800 = vmatpush3.bf16.msra.mxu1 %v3955_v0 }
 0x182   :  { %v2743_v33 = vadd.f32 %v2742_v62, %v2477_v45  ;;  %v2894_v11 = vadd.f32 %v2893_v21, %v2608_v3  ;;  %v2609_v27 = vmax.f32 %v2236_v15, 0.0  ;;  %v2482_v51 = vmax.f32 %v3621_v54, 0.0  ;;  %3801 = vmatprep.subr.bf16.mxu1 %v4002_v32 }
 0x183   :  { %v1721_v25 = vpop.f32.mrf.mxu0  ;;  %v3753_v46 = vpop.f32.mrf.mxu1 }
 0x184   :  { %v2744_v31 = vadd.f32 %v2743_v33, %v2478_v49  ;;  %v2480_v40 = vmax.f32 %v1721_v25, 0.0  ;;  %v2895_v47 = vadd.f32 %v2894_v11, %v2609_v27  ;;  %v2614_v37 = vmax.f32 %v3753_v46, 0.0 }
 0x185   :  { %v3622_v5 = vpop.f32.mrf.mxu0  ;;  %v2249_v17 = vpop.f32.mrf.mxu1 }
 0x186   :  { %v2745_v9 = vadd.f32 %v2744_v31, %v2479_v24  ;;  %v2896_v58 = vadd.f32 %v2895_v47, %v2610_v19  ;;  %v2612_v63 = vmax.f32 %v2249_v17, 0.0  ;;  %v2483_v59 = vmax.f32 %v3622_v5, 0.0 }
 0x187   :  { %v1724_v41 = vpop.f32.mrf.mxu0  ;;  %v3754_v62 = vpop.f32.mrf.mxu1 }
 0x188   :  { %v2746_v26 = vadd.f32 %v2745_v9, %v2480_v40  ;;  %v2481_v53 = vmax.f32 %v1724_v41, 0.0  ;;  %v2897_v42 = vadd.f32 %v2896_v58, %v2611_v10  ;;  %v2615_v11 = vmax.f32 %v3754_v62, 0.0 }
 0x189   :  { %v3625_v36 = vpop.f32.mrf.mxu0  ;;  %v2252_v49 = vpop.f32.mrf.mxu1 }
 0x18a   :  { %v2747_v35 = vadd.f32 %v2746_v26, %v2481_v53  ;;  %v2898_v25 = vadd.f32 %v2897_v42, %v2612_v63  ;;  %v2613_v21 = vmax.f32 %v2252_v49, 0.0  ;;  %v2486_v47 = vmax.f32 %v3625_v36, 0.0 }
 0x18b   :  { %v1737_v45 = vpop.f32.mrf.mxu0  ;;  %v3757_v15 = vpop.f32.mrf.mxu1 }
 0x18c   :  { %v2748_v3 = vadd.f32 %v2747_v35, %v2482_v51  ;;  %v2484_v24 = vmax.f32 %v1737_v45, 0.0  ;;  %v2899_v54 = vadd.f32 %v2898_v25, %v2613_v21  ;;  %v2618_v35 = vmax.f32 %v3757_v15, 0.0 }
 0x18d   :  { %v3626_v33 = vpop.f32.mrf.mxu0  ;;  %v2265_v9 = vpop.f32.mrf.mxu1 }
 0x18e   :  { %v2749_v31 = vadd.f32 %v2748_v3, %v2483_v59  ;;  %v2900_v10 = vadd.f32 %v2899_v54, %v2614_v37  ;;  %v2616_v46 = vmax.f32 %v2265_v9, 0.0  ;;  %v2487_v0 = vmax.f32 %v3626_v33, 0.0 }
 0x18f   :  { %v1740_v19 = vpop.f32.mrf.mxu0  ;;  %v3758_v5 = vpop.f32.mrf.mxu1 }
 0x190   :  { %v2750_v27 = vadd.f32 %v2749_v31, %v2484_v24  ;;  %v2485_v40 = vmax.f32 %v1740_v19, 0.0  ;;  %v4650_v17 = vadd.f32 %v2900_v10, %v2615_v11  ;;  %v2619_v24 = vmax.f32 %v3758_v5, 0.0 }
 0x191   :  { %v3629_v41 = vpop.f32.mrf.mxu0  ;;  %v2268_v63 = vpop.f32.mrf.mxu1 }
 0x192   :  { %v2751_v26 = vadd.f32 %v2750_v27, %v2485_v40  ;;  %v2617_v45 = vmax.f32 %v2268_v63, 0.0  ;;  %v2490_v11 = vmax.f32 %v3629_v41, 0.0 }
 0x193   :  { %v1753_v53 = vpop.f32.mrf.mxu0  ;;  %v3761_v42 = vpop.f32.mrf.mxu1 }
 0x194   :  { %v2752_v58 = vadd.f32 %v2751_v26, %v2486_v47  ;;  %v2908_v3 = vadd.f32 %v2617_v45, %v2616_v46  ;;  %v2488_v25 = vmax.f32 %v1753_v53, 0.0 }
 0x195   :  { %v3630_v51 = vpop.f32.mrf.mxu0  ;;  %v2281_v36 = vpop.f32.mrf.mxu1 }
 0x196   :  { %v2753_v62 = vadd.f32 %v2752_v58, %v2487_v0  ;;  %v2909_v31 = vadd.f32 %v2908_v3, %v2618_v35  ;;  %v2491_v9 = vmax.f32 %v3630_v51, 0.0  ;;  %v2620_v47 = vmax.f32 %v2281_v36, 0.0 }
 0x197   :  { %v1756_v59 = vpop.f32.mrf.mxu0  ;;  %v3762_v33 = vpop.f32.mrf.mxu1 }
 0x198   :  { %v2754_v49 = vrot.slane %v2753_v62, 4  ;;  %v2489_v37 = vmax.f32 %v1756_v59, 0.0  ;;  %v2910_v26 = vadd.f32 %v2909_v31, %v2619_v24 }
 0x199   :  { %v3633_v21 = vpop.f32.mrf.mxu0  ;;  %v2284_v53 = vpop.f32.mrf.mxu1 }
 0x19a   :  { %v2755_v19 = vadd.f32 %v2754_v49, %v2753_v62  ;;  %v2760_v54 = vadd.f32 %v2489_v37, %v2488_v25  ;;  %v2911_v41 = vadd.f32 %v2910_v26, %v2620_v47  ;;  %v2621_v62 = vmax.f32 %v2284_v53, 0.0  ;;  %v3956_v47 = vld [vmem:[%s4706_s2] sm:$0xff]   ;;  %s4004_s2 = smov [#allocation3]  }
 0x19b   :  { %v1769_v27 = vpop.f32.mrf.mxu0  ;;  %v2494_v49 = vmax.f32 %v3633_v21, 0.0  ;;  %v3765_v51 = vpop.f32.mrf.mxu1  ;;  %3802 = vmatpush3.bf16.msra.mxu1 %v3956_v47  ;;  %s3095_s9 = sshll.u32 %s4004_s2, 4  ;;  %s3096_s9 = int_to_ptr.vmem [resolvable:$true] %s3095_s9 }
 0x19c   :  { %v2756_v40 = vrot.slane %v2755_v19, 2  ;;  %v2761_v15 = vadd.f32 %v2760_v54, %v2490_v11  ;;  %v2492_v46 = vmax.f32 %v1769_v27, 0.0  ;;  %v2622_v11 = vmax.f32 %v3761_v42, 0.0  ;;  %s3957_s10 = scalar_lea.vmem %s3096_s9, 128  ;;  %p3962_p1 = scmp.lt.s32.totalorder %s3096_s9, %s3096_s9 }
 0x19d   :  { %v3634_v10 = vpop.f32.mrf.mxu0  ;;  %v2912_v54 = vadd.f32 %v2911_v41, %v2621_v62  ;;  %v2626_v47 = vmax.f32 %v3765_v51, 0.0  ;;  %p3958_p0 = scmp.ne.s32.totalorder %s3096_s9, %s3957_s10  ;;  %p3963_p2 = scmp.lt.s32.totalorder %s3957_s10, %s3957_s10 }
 0x19e   :  { %v2757_v0 = vadd.f32 %v2756_v40, %v2755_v19  ;;  %v2762_v58 = vadd.f32 %v2761_v15, %v2491_v9  ;;  %v2495_v24 = vmax.f32 %v3634_v10, 0.0  ;;  %v2297_v9 = vpop.f32.mrf.mxu1 }
 0x19f   :  { %v1772_v63 = vpop.f32.mrf.mxu0  ;;  %p3964_p3 = por %p3963_p2, %p3962_p1 }
 0x1a0   :  { %v2758_v45 = vrot.slane %v2757_v0, 1  ;;  %v2763_v59 = vadd.f32 %v2762_v58, %v2492_v46  ;;  %v2493_v5 = vmax.f32 %v1772_v63, 0.0  ;;  %v2623_v46 = vmax.f32 %v3762_v33, 0.0  ;;  %v3766_v53 = vpop.f32.mrf.mxu1 }
 0x1a1   :  { %v3637_v35 = vpop.f32.mrf.mxu0  ;;  %v2913_v58 = vadd.f32 %v2912_v54, %v2622_v11  ;;  %p3965_p4 = pnand %p3964_p3, %p3958_p0 }
 0x1a2   :  { %v2759_v3 = vadd.f32 %v2758_v45, %v2757_v0  ;;  %v2764_v25 = vadd.f32 %v2763_v59, %v2493_v5  ;;  %v2624_v5 = vmax.f32 %v2297_v9, 0.0 }
 0x1a3   :  { %v1785_v37 = vpop.f32.mrf.mxu0  ;;  %v2914_v41 = vadd.f32 %v2913_v58, %v2623_v46 }
 0x1a4   :  { %v4653_v36 = vsel %vm2955_vm4, %v2759_v3, %v4640_v6  ;;  %v2765_v31 = vadd.f32 %v2764_v25, %v2494_v49  ;;  %v2496_v27 = vmax.f32 %v1785_v37, 0.0  ;;  %v2498_v6 = vmax.f32 %v3637_v35, 0.0  ;;  %v2300_v49 = vpop.f32.mrf.mxu1 }
 0x1a5   :  { %v3638_v19 = vpop.f32.mrf.mxu0  ;;  %v2625_v35 = vmax.f32 %v2300_v49, 0.0 }
 0x1a6   :  { %v2766_v40 = vadd.f32 %v2765_v31, %v2495_v24  ;;  %v2499_v42 = vmax.f32 %v3638_v19, 0.0  ;;  %v2915_v31 = vadd.f32 %v2914_v41, %v2624_v5 }
 0x1a7   :  { %v1788_v15 = vpop.f32.mrf.mxu0 }
 0x1a8   :  { %v2767_v21 = vadd.f32 %v2766_v40, %v2496_v27  ;;  %v2497_v26 = vmax.f32 %v1788_v15, 0.0  ;;  %v3769_v27 = vpop.f32.mrf.mxu1 }
 0x1a9   :  { %v3641_v0 = vpop.f32.mrf.mxu0 }
 0x1aa   :  { %v2768_v10 = vadd.f32 %v2767_v21, %v2497_v26  ;;  %v2502_v11 = vmax.f32 %v3641_v0, 0.0  ;;  %v2916_v21 = vadd.f32 %v2915_v31, %v2625_v35  ;;  %v2313_v46 = vpop.f32.mrf.mxu1 }
 0x1ab   :  { %v1801_v63 = vpop.f32.mrf.mxu0 }
 0x1ac   :  { %v2769_v45 = vadd.f32 %v2768_v10, %v2498_v6  ;;  %v2500_v62 = vmax.f32 %v1801_v63, 0.0  ;;  %v3770_v0 = vpop.f32.mrf.mxu1 }
 0x1ad   :  { %v3642_v59 = vpop.f32.mrf.mxu0 }
 0x1ae   :  { %v2770_v3 = vadd.f32 %v2769_v45, %v2499_v42  ;;  %v2503_v15 = vmax.f32 %v3642_v59, 0.0  ;;  %v2627_v42 = vmax.f32 %v3766_v53, 0.0  ;;  %v2917_v45 = vadd.f32 %v2916_v21, %v2626_v47  ;;  %v2316_v31 = vpop.f32.mrf.mxu1 }
 0x1af   :  { %v1804_v25 = vpop.f32.mrf.mxu0 }
 0x1b0   :  { %v2771_v37 = vadd.f32 %v2770_v3, %v2500_v62  ;;  %v2501_v33 = vmax.f32 %v1804_v25, 0.0  ;;  %v2628_v25 = vmax.f32 %v2313_v46, 0.0 }
 0x1b1   :  { %v3645_v24 = vpop.f32.mrf.mxu0 }
 0x1b2   :  { %v2772_v54 = vadd.f32 %v2771_v37, %v2501_v33  ;;  %v2506_v5 = vmax.f32 %v3645_v24, 0.0  ;;  %v2918_v37 = vadd.f32 %v2917_v45, %v2627_v42  ;;  %v3773_v24 = vpop.f32.mrf.mxu1 }
 0x1b3   :  { %v1817_v40 = vpop.f32.mrf.mxu0 }
 0x1b4   :  { %v2773_v32 = vadd.f32 %v2772_v54, %v2502_v11  ;;  %v2504_v9 = vmax.f32 %v1817_v40, 0.0  ;;  %v2329_v42 = vpop.f32.mrf.mxu1 }
 0x1b5   :  { %v3646_v19 = vpop.f32.mrf.mxu0 }
 0x1b6   :  { %v2774_v26 = vadd.f32 %v2773_v32, %v2503_v15  ;;  %v2507_v3 = vmax.f32 %v3646_v19, 0.0  ;;  %v2919_v15 = vadd.f32 %v2918_v37, %v2628_v25  ;;  %v2629_v32 = vmax.f32 %v2316_v31, 0.0 }
 0x1b7   :  { %v1820_v58 = vpop.f32.mrf.mxu0 }
 0x1b8   :  { %v2775_v6 = vadd.f32 %v2774_v26, %v2504_v9  ;;  %v2505_v10 = vmax.f32 %v1820_v58, 0.0  ;;  %v2630_v58 = vmax.f32 %v3769_v27, 0.0 }
 0x1b9   :  { %v3649_v63 = vpop.f32.mrf.mxu0 }
 0x1ba   :  { %v2776_v41 = vadd.f32 %v2775_v6, %v2505_v10  ;;  %v2510_v53 = vmax.f32 %v3649_v63, 0.0  ;;  %v2920_v6 = vadd.f32 %v2919_v15, %v2629_v32  ;;  %v3774_v63 = vpop.f32.mrf.mxu1 }
 0x1bb   :  { %v1833_v62 = vpop.f32.mrf.mxu0 }
 0x1bc   :  { %v2777_v49 = vadd.f32 %v2776_v41, %v2506_v5  ;;  %v2508_v51 = vmax.f32 %v1833_v62, 0.0  ;;  %v2332_v15 = vpop.f32.mrf.mxu1 }
 0x1bd   :  { %v3650_v59 = vpop.f32.mrf.mxu0 }
 0x1be   :  { %v2778_v33 = vadd.f32 %v2777_v49, %v2507_v3  ;;  %v2511_v9 = vmax.f32 %v3650_v59, 0.0  ;;  %v2631_v3 = vmax.f32 %v3770_v0, 0.0  ;;  %v2921_v49 = vadd.f32 %v2920_v6, %v2630_v58 }
 0x1bf   :  { %v1836_v35 = vpop.f32.mrf.mxu0 }
 0x1c0   :  { %v2779_v11 = vadd.f32 %v2778_v33, %v2508_v51  ;;  %v2509_v54 = vmax.f32 %v1836_v35, 0.0  ;;  %v2632_v35 = vmax.f32 %v2329_v42, 0.0 }
 0x1c1   :  { %v3653_v40 = vpop.f32.mrf.mxu0 }
 0x1c2   :  { %v2780_v47 = vadd.f32 %v2779_v11, %v2509_v54  ;;  %v2514_v25 = vmax.f32 %v3653_v40, 0.0  ;;  %v2922_v11 = vadd.f32 %v2921_v49, %v2631_v3  ;;  %v3777_v40 = vpop.f32.mrf.mxu1 }
 0x1c3   :  { %v1849_v21 = vpop.f32.mrf.mxu0 }
 0x1c4   :  { %v2781_v26 = vadd.f32 %v2780_v47, %v2510_v53  ;;  %v2512_v46 = vmax.f32 %v1849_v21, 0.0 }
 0x1c5   :  { %v3654_v19 = vpop.f32.mrf.mxu0 }
 0x1c6   :  { %v2782_v10 = vadd.f32 %v2781_v26, %v2511_v9  ;;  %v2515_v33 = vmax.f32 %v3654_v19, 0.0  ;;  %v2923_v9 = vadd.f32 %v2922_v11, %v2632_v35  ;;  %v2633_v26 = vmax.f32 %v2332_v15, 0.0 }
 0x1c7   :  { %v1852_v45 = vpop.f32.mrf.mxu0 }
 0x1c8   :  { %v2783_v5 = vadd.f32 %v2782_v10, %v2512_v46  ;;  %v2513_v41 = vmax.f32 %v1852_v45, 0.0  ;;  %v2634_v45 = vmax.f32 %v3773_v24, 0.0  ;;  %v2524_v24 = vmax.f32 %v4466_v56, 0.0 }
 0x1c9   :  { %v3657_v62 = vpop.f32.mrf.mxu0 }
 0x1ca   :  { %v2784_v37 = vadd.f32 %v2783_v5, %v2513_v41  ;;  %v2518_v0 = vmax.f32 %v3657_v62, 0.0  ;;  %v2924_v5 = vadd.f32 %v2923_v9, %v2633_v26  ;;  %v2345_v41 = vpop.f32.mrf.mxu1  ;;  %v2525_v26 = vmax.f32 %v4478_v2, 0.0 }
 0x1cb   :  { %v1865_v51 = vpop.f32.mrf.mxu0  ;;  %v2528_v2 = vmax.f32 %v4490_v12, 0.0 }
 0x1cc   :  { %v2785_v31 = vadd.f32 %v2784_v37, %v2514_v25  ;;  %v2516_v27 = vmax.f32 %v1865_v51, 0.0  ;;  %v2635_v51 = vmax.f32 %v3774_v63, 0.0  ;;  %v3778_v62 = vpop.f32.mrf.mxu1 }
 0x1cd   :  { %v3658_v59 = vpop.f32.mrf.mxu0 }
 0x1ce   :  { %v2786_v54 = vadd.f32 %v2785_v31, %v2515_v33  ;;  %v2519_v46 = vmax.f32 %v3658_v59, 0.0  ;;  %v2925_v33 = vadd.f32 %v2924_v5, %v2634_v45  ;;  %v2636_v59 = vmax.f32 %v2345_v41, 0.0  ;;  %v2348_v9 = vpop.f32.mrf.mxu1 }
 0x1cf   :  { %v1868_v32 = vpop.f32.mrf.mxu0  ;;  %v2527_v45 = vmax.f32 %v4470_v60, 0.0  ;;  %v2531_v60 = vmax.f32 %v4494_v16, 0.0 }
 0x1d0   :  { %v2787_v53 = vadd.f32 %v2786_v54, %v2516_v27  ;;  %v2517_v47 = vmax.f32 %v1868_v32, 0.0  ;;  %v2926_v32 = vadd.f32 %v2925_v33, %v2635_v51  ;;  %v2639_v51 = vmax.f32 %v3778_v62, 0.0 }
 0x1d1   :  { %v3661_v21 = vpop.f32.mrf.mxu0  ;;  %v2530_v33 = vmax.f32 %v4486_v8, 0.0  ;;  %v2534_v62 = vmax.f32 %v4513_v29, 0.0 }
 0x1d2   :  { %v2788_v58 = vadd.f32 %v2787_v53, %v2517_v47  ;;  %v2522_v35 = vmax.f32 %v3661_v21, 0.0  ;;  %v2927_v63 = vadd.f32 %v2926_v32, %v2636_v59  ;;  %v2526_v21 = vmax.f32 %v4462_v52, 0.0 }
 0x1d3   :  { %v1881_v6 = vpop.f32.mrf.mxu0 }
 0x1d4   :  { %v2789_v10 = vadd.f32 %v2788_v58, %v2518_v0  ;;  %v2520_v25 = vmax.f32 %v1881_v6, 0.0  ;;  %v2637_v6 = vmax.f32 %v2348_v9, 0.0 }
 0x1d5   :  { %v3662_v19 = vpop.f32.mrf.mxu0 }
 0x1d6   :  { %v2790_v42 = vadd.f32 %v2789_v10, %v2519_v46  ;;  %v2523_v54 = vmax.f32 %v3662_v19, 0.0  ;;  %v3781_v19 = vpop.f32.mrf.mxu1  ;;  %v2928_v41 = vadd.f32 %v2927_v63, %v2637_v6 }
 0x1d7   :  { %v1884_v3 = vpop.f32.mrf.mxu0  ;;  %v2642_v16 = vmax.f32 %v3781_v19, 0.0  ;;  %v2540_v19 = vmax.f32 %v4569_v18, 0.0  ;;  %v2545_v18 = vmax.f32 %v4603_v57, 0.0 }
 0x1d8   :  { %v2791_v49 = vrot.slane %v2790_v42, 4  ;;  %v2521_v37 = vmax.f32 %v1884_v3, 0.0 }
 0x1da   :  { %v2792_v31 = vadd.f32 %v2791_v49, %v2790_v42  ;;  %v2797_v11 = vadd.f32 %v2521_v37, %v2520_v25  ;;  %v2638_v42 = vmax.f32 %v3777_v40, 0.0  ;;  %v2361_v49 = vpop.f32.mrf.mxu1  ;;  %v2529_v25 = vmax.f32 %v4502_v22, 0.0 }
 0x1db   :  { %v2532_v40 = vmax.f32 %v4517_v34, 0.0 }
 0x1dc   :  { %v2793_v27 = vrot.slane %v2792_v31, 2  ;;  %v2798_v15 = vadd.f32 %v2797_v11, %v2522_v35  ;;  %v2929_v52 = vadd.f32 %v2928_v41, %v2638_v42  ;;  %v3782_v35 = vpop.f32.mrf.mxu1  ;;  %v2640_v11 = vmax.f32 %v2361_v49, 0.0 }
 0x1dd   :  { %v2541_v41 = vmax.f32 %v4582_v30, 0.0  ;;  %v2542_v49 = vmax.f32 %v4565_v13, 0.0  ;;  %v2546_v30 = vmax.f32 %v4590_v39, 0.0 }
 0x1de   :  { %v2794_v53 = vadd.f32 %v2793_v27, %v2792_v31  ;;  %v2799_v47 = vadd.f32 %v2798_v15, %v2523_v54  ;;  %v2930_v27 = vadd.f32 %v2929_v52, %v2639_v51  ;;  %v2364_v12 = vpop.f32.mrf.mxu1  ;;  %v2533_v15 = vmax.f32 %v4530_v44, 0.0 }
 0x1df   :  { %v2641_v32 = vmax.f32 %v2364_v12, 0.0  ;;  %v2643_v44 = vmax.f32 %v3782_v35, 0.0  ;;  %v2544_v52 = vmax.f32 %v4594_v43, 0.0  ;;  %v2549_v43 = vmax.f32 %v4620_v20, 0.0 }
 0x1e0   :  { %v2795_v0 = vrot.slane %v2794_v53, 1  ;;  %v2800_v58 = vadd.f32 %v2799_v47, %v2524_v24  ;;  %v2931_v22 = vadd.f32 %v2930_v27, %v2640_v11  ;;  %v3785_v8 = vpop.f32.mrf.mxu1  ;;  %v2547_v11 = vmax.f32 %v4598_v48, 0.0 }
 0x1e1   :  { %v2646_v51 = vmax.f32 %v3785_v8, 0.0  ;;  %v2902_v12 = vrot.slane %v4650_v17, 4  ;;  %v2551_v48 = vmax.f32 %v4618_v14, 0.0 }
 0x1e2   :  { %v2796_v46 = vadd.f32 %v2795_v0, %v2794_v53  ;;  %v2801_v10 = vadd.f32 %v2800_v58, %v2525_v26  ;;  %v2535_v53 = vmax.f32 %v4522_v38, 0.0  ;;  %v2932_v9 = vadd.f32 %v2931_v22, %v2641_v32  ;;  %v2377_v34 = vpop.f32.mrf.mxu1 }
 0x1e3   :  { %v2536_v26 = vmax.f32 %v4542_v55, 0.0  ;;  %v2537_v58 = vmax.f32 %v4554_v4, 0.0  ;;  %v2644_v38 = vmax.f32 %v2377_v34, 0.0  ;;  %v2903_v32 = vadd.f32 %v2902_v12, %v4650_v17 }
 0x1e4   :  { %v4664_v5 = vsel %vm2957_vm6, %v2796_v46, %v4653_v36  ;;  %v2802_v56 = vadd.f32 %v2801_v10, %v2526_v21  ;;  %v2933_v6 = vadd.f32 %v2932_v9, %v2642_v16  ;;  %v2538_v21 = vmax.f32 %v4538_v50, 0.0  ;;  %v3786_v29 = vpop.f32.mrf.mxu1 }
 0x1e5   :  { %v2539_v10 = vmax.f32 %v4546_v61, 0.0  ;;  %v2543_v50 = vmax.f32 %v4574_v23, 0.0  ;;  %v2647_v35 = vmax.f32 %v3786_v29, 0.0  ;;  %v2548_v23 = vmax.f32 %v4614_v7, 0.0 }
 0x1e6   :  { %v2803_v3 = vadd.f32 %v2802_v56, %v2527_v45  ;;  %v2934_v56 = vadd.f32 %v2933_v6, %v2643_v44  ;;  %v2380_v55 = vpop.f32.mrf.mxu1 }
 0x1e8   :  { %v2804_v37 = vadd.f32 %v2803_v3, %v2528_v2  ;;  %v2935_v4 = vadd.f32 %v2934_v56, %v2644_v38  ;;  %v2645_v3 = vmax.f32 %v2380_v55, 0.0 }
 0x1ea   :  { %v2805_v31 = vadd.f32 %v2804_v37, %v2529_v25  ;;  %v2936_v61 = vadd.f32 %v2935_v4, %v2645_v3 }
 0x1ec   :  { %v2806_v36 = vadd.f32 %v2805_v31, %v2530_v33 }
 0x1ee   :  { %v2807_v54 = vadd.f32 %v2806_v36, %v2531_v60  ;;  %v2937_v60 = vadd.f32 %v2936_v61, %v2646_v51 }
 0x1f0   :  { %v2808_v59 = vadd.f32 %v2807_v54, %v2532_v40  ;;  %v2938_v27 = vadd.f32 %v2937_v60, %v2647_v35  ;;  %v2865_v54 = vrot.slane %v4638_v28, 4 }
 0x1f2   :  { %v2809_v24 = vadd.f32 %v2808_v59, %v2533_v15  ;;  %v2939_v15 = vrot.slane %v2938_v27, 4  ;;  %v2550_v59 = vmax.f32 %v4611_v1, 0.0  ;;  %v2866_v39 = vadd.f32 %v2865_v54, %v4638_v28 }
 0x1f4   :  { %v2810_v47 = vadd.f32 %v2809_v24, %v2534_v62  ;;  %v2940_v7 = vadd.f32 %v2939_v15, %v2938_v27  ;;  %v2867_v8 = vrot.slane %v2866_v39, 2 }
 0x1f6   :  { %v2811_v0 = vadd.f32 %v2810_v47, %v2535_v53  ;;  %v2904_v53 = vrot.slane %v2903_v32, 2  ;;  %v2941_v20 = vrot.slane %v2940_v7, 2  ;;  %v2868_v9 = vadd.f32 %v2867_v8, %v2866_v39 }
 0x1f8   :  { %v2812_v63 = vadd.f32 %v2811_v0, %v2536_v26  ;;  %v2905_v26 = vadd.f32 %v2904_v53, %v2903_v32  ;;  %v2942_v34 = vadd.f32 %v2941_v20, %v2940_v7 }
 0x1fa   :  { %v2813_v46 = vadd.f32 %v2812_v63, %v2537_v58  ;;  %v2869_v58 = vrot.slane %v2868_v9, 1  ;;  %v2906_v63 = vrot.slane %v2905_v26, 1  ;;  %v2943_v44 = vrot.slane %v2942_v34, 1 }
 0x1fc   :  { %v2814_v45 = vadd.f32 %v2813_v46, %v2538_v21  ;;  %v2870_v17 = vadd.f32 %v2869_v58, %v2868_v9  ;;  %v2907_v6 = vadd.f32 %v2906_v63, %v2905_v26  ;;  %v2944_v46 = vadd.f32 %v2943_v44, %v2942_v34 }
 0x1fe   :  { %v2815_v42 = vadd.f32 %v2814_v45, %v2539_v10 }
 0x200   :  { %v2816_v2 = vadd.f32 %v2815_v42, %v2540_v19 }
 0x202   :  { %v2817_v25 = vadd.f32 %v2816_v2, %v2541_v41 }
 0x204   :  { %v2818_v37 = vadd.f32 %v2817_v25, %v2542_v49 }
 0x206   :  { %v2819_v33 = vadd.f32 %v2818_v37, %v2543_v50 }
 0x208   :  { %v2820_v31 = vadd.f32 %v2819_v33, %v2544_v52 }
 0x20a   :  { %v2821_v36 = vadd.f32 %v2820_v31, %v2545_v18 }
 0x20c   :  { %v2822_v13 = vadd.f32 %v2821_v36, %v2546_v30 }
 0x20e   :  { %v2823_v40 = vadd.f32 %v2822_v13, %v2547_v11 }
 0x210   :  { %v2824_v57 = vadd.f32 %v2823_v40, %v2548_v23 }
 0x212   :  { %v2825_v22 = vadd.f32 %v2824_v57, %v2549_v43 }
 0x214   :  { %v2826_v62 = vadd.f32 %v2825_v22, %v2550_v59 }
 0x216   :  { %v2827_v24 = vadd.f32 %v2826_v62, %v2551_v48 }
 0x218   :  { %v2828_v47 = vrot.slane %v2827_v24, 4 }
 0x21a   :  { %v2829_v16 = vadd.f32 %v2828_v47, %v2827_v24 }
 0x21c   :  { %v2830_v0 = vrot.slane %v2829_v16, 2 }
 0x21e   :  { %v2831_v1 = vadd.f32 %v2830_v0, %v2829_v16 }
 0x220   :  { %v2832_v28 = vrot.slane %v2831_v1, 1 }
 0x222   :  { %v2833_v14 = vadd.f32 %v2832_v28, %v2831_v1 }
 0x224   :  { %v2960_v21 = vsel %vm2959_vm7, %v2833_v14, %v4664_v5 }
 0x225   :  { %v2962_v29 = vsel %vm2961_vm8, %v2870_v17, %v2960_v21 }
 0x226   :  { %v2964_v10 = vsel %vm2963_vm9, %v2907_v6, %v2962_v29 }
 0x227   :  { %v2966_v45 = vsel %vm2965_vm10, %v2944_v46, %v2964_v10 }
 0x228   :  { %v2974_v38 = vmul.f32 0.00390625, %v2966_v45 }
 0x22a   :  { %2975 = vst [vmem:[#allocation3] sm:$0xff] %v2974_v38  ;;  %v2976_v56 = vpack.c.bf16 %v2974_v38, %v2974_v38 }
 0x22c   :  { %3804 = vmatmul.mubr.bf16.vlgmr.msra.gmra.mxu1 %v2976_v56 }
 0x22d   :  { %3968 = shalt.err (!%p3965_p4)
}
 0x22e   :  { %3098 = dma.vmem_to_hbm [thread:$0]  %s3096_s9, 128, %s4708_s4, [#allocation4]   ;;  %v3376_v5 = vld [vmem:[%s4707_s3] ss:$0 sm:$0xff] }
 0x22f   :  { %s4005_s15 = smov [#allocation5]  }
 0x230   :  { %s3105_s16 = sshll.u32 %s4005_s15, 4  ;;  %s3106_s16 = int_to_ptr.vmem [resolvable:$true] %s3105_s16 }
 0x231   :  { %s3977_s17 = scalar_lea.vmem %s3106_s16, 128  ;;  %p3982_p6 = scmp.lt.s32.totalorder %s3106_s16, %s3106_s16 }
 0x232   :  { %p3978_p5 = scmp.ne.s32.totalorder %s3106_s16, %s3977_s17  ;;  %p3983_p7 = scmp.lt.s32.totalorder %s3977_s17, %s3977_s17 }
 0x234   :  { %p3984_p8 = por %p3983_p7, %p3982_p6 }
 0x236   :  { %p3985_p9 = pnand %p3984_p8, %p3978_p5 }
 0x2ec   :  { %v3082_v19 = vpop.f32.mrf.mxu1 }
 0x2ed   :  { %v3083_v42 = vadd.f32 %v3376_v5, %v3082_v19 }
 0x2ee   :  { %v3805_v55 = vpop.f32.mrf.mxu1 }
 0x2ef   :  { %3088 = vst [vmem:[#allocation5] sm:$0xff] %v3083_v42 }
 0x2f0   :  { %v3085_v41 = vpop.f32.mrf.mxu1 }
 0x2f1   :  { %3988 = shalt.err (!%p3985_p9)
}
 0x2f2   :  { %3108 = dma.vmem_to_hbm [thread:$0]  %s3106_s16, 128, %s4709_s5, [#allocation6]   ;;  %v3806_v2 = vpop.f32.mrf.mxu1 }
 0x2f3   :  { %3997 = dma.done.wait [#allocation4], 128  }
 0x2f4   :  { %3998 = vsyncadd [#allocation4], 4294967168 }
 0x2f5   :  { %3999 = dma.done.wait [#allocation6], 128  }
 0x2f6   :  { %4000 = vsyncadd [#allocation6], 4294967168 }
 0x2f7   :  { %3115 = vsyncpa [#allocation4], 1 }
 0x2f8   :  { %3116 = vsyncpa [#allocation6], 1 }

</bundles_post_ra>
